<compile_context>
chip_gen: v7x
topology: tpu7x:2x2x1
jax: 0.10.0
libtpu: 0.0.40
codegen_flags: <defaults>
</compile_context>

<pallas_src>
import functools
import inspect

import jax
import jax.numpy as jnp
from jax.experimental import pallas as pl
from jax.experimental.pallas import tpu as pltpu


def _round_up(x, m):
    return ((x + m - 1) // m) * m


def _supports_single_buffering():
    """True if this jax exposes pl.Buffered + BlockSpec(pipeline_mode=...)."""
    if not hasattr(pl, "Buffered"):
        return False
    try:
        return "pipeline_mode" in inspect.signature(pl.BlockSpec).parameters
    except (TypeError, ValueError):
        return False


_HAS_PIPELINE_MODE = _supports_single_buffering()


# --------------------------------------------------------------------------- #
# Kernel
# --------------------------------------------------------------------------- #
def bcq_kernel(state_ref, w1_ref, b1_ref, w2_ref, b2_ref, w3_ref, b3_ref,
               out_ref, *, n_actions):
    H = w2_ref.shape[-1]      # hidden size
    OP = w3_ref.shape[-1]     # packed output lane width (multiple of 128)
    A = n_actions

    # Matmul inputs in bf16 (MXU native); accumulate in f32.
    # NOTE: casting the observations to bf16 loses precision for
    # large-magnitude states; keep f32 state_ref and cast only here so the
    # accumulation path stays f32.
    s = state_ref[...].astype(jnp.bfloat16)                      # (TB, obs)

    # Hoist bias reads once (JAX does not CSE broadcasts).
    b1 = b1_ref[...]                                             # (1, 2H) f32
    b2q = b2_ref[0:1, :]                                         # (1, H)
    b2i = b2_ref[1:2, :]
    b3q = b3_ref[0:1, :]                                         # (1, OP)
    b3i = b3_ref[1:2, :]

    # ---- Fused layer 1 (both branches share the same input) ----
    # (K = obs is tiny so the MXU contraction is mostly empty; a VPU rank-1
    #  path was considered for v6e but is likely a wash without bundle data.)
    h1 = jnp.dot(s, w1_ref[...], preferred_element_type=jnp.float32) + b1
    h1 = jnp.maximum(h1, 0.0)                                    # (TB, 2H) f32
    hq = h1[:, :H].astype(jnp.bfloat16)
    hi = h1[:, H:].astype(jnp.bfloat16)

    # ---- Layer 2 ---- (elementwise kept in f32: safe on v5e's f32-only VPU)
    hq = jnp.maximum(
        jnp.dot(hq, w2_ref[0], preferred_element_type=jnp.float32) + b2q, 0.0
    ).astype(jnp.bfloat16)
    hi = jnp.maximum(
        jnp.dot(hi, w2_ref[1], preferred_element_type=jnp.float32) + b2i, 0.0
    ).astype(jnp.bfloat16)

    # ---- Layer 3: weights/biases pre-placed in pack_params ----
    #   q_slab : q-values at lanes [0, A), exact zeros elsewhere
    #   i_slab : i logits at lanes [A, 2A), duplicated at [2A, 3A), zeros else
    q_slab = jnp.dot(hq, w3_ref[0], preferred_element_type=jnp.float32) + b3q
    i_slab = jnp.dot(hi, w3_ref[1], preferred_element_type=jnp.float32) + b3i

    # ---- log_softmax in place over lanes [A, 2A) ----
    lane = jax.lax.broadcasted_iota(jnp.int32, i_slab.shape, dimension=1)
    in_sm = jnp.logical_and(lane >= A, lane < 2 * A)
    masked = jnp.where(in_sm, i_slab, jnp.float32(-1e30))
    i_max = jnp.max(masked, axis=-1, keepdims=True)
    shifted = masked - i_max
    lse = jnp.log(jnp.sum(jnp.exp(shifted), axis=-1, keepdims=True))
    log_sm = shifted - lse                                       # valid at [A, 2A)

    # Packed, lane-dense, unmasked 128-lane store:
    #   lanes [0,A)=q, [A,2A)=log_softmax(i), [2A,3A)=i, [3A,OP)=0.
    out_ref[...] = jnp.where(lane < A, q_slab,
                             jnp.where(lane < 2 * A, log_sm, i_slab))


# --------------------------------------------------------------------------- #
# Param packing (torch-style Linear params -> packed / placed / bf16)
# --------------------------------------------------------------------------- #
def pack_params(p, weight_dtype=jnp.bfloat16):
    """Pack the 12 per-layer tensors into 6 arrays.

    Input weights MUST be (in_features, out_features); biases (1, out).
    (torch nn.Linear.weight is (out, in) -> transpose before calling this.)
    Layer-3 weights/biases are placed into the packed-output lane layout."""
    H = p["qw2"].shape[0]
    A = p["qw3"].shape[1]
    obs = p["qw1"].shape[0]

    # Orientation / shape checks (catches un-transposed torch weights).
    assert p["qw2"].shape == (H, H) and p["iw2"].shape == (H, H), \
        "layer-2 weights must be (in, out) = (H, H)"
    assert p["qw1"].shape == (obs, H) and p["iw1"].shape == (obs, H), \
        "weights must be (in, out); transpose torch nn.Linear.weight"
    assert p["qw3"].shape == (H, A) and p["iw3"].shape == (H, A), \
        "layer-3 weights must be (in, out) = (H, n_actions)"
    for name in ("qb1", "ib1", "qb2", "ib2"):
        assert p[name].shape == (1, H), f"{name} must be (1, H)"
    for name in ("qb3", "ib3"):
        assert p[name].shape == (1, A), f"{name} must be (1, n_actions)"

    OP = _round_up(3 * A, 128)      # lane-dense packed output width

    w1 = jnp.concatenate([p["qw1"], p["iw1"]], axis=1).astype(weight_dtype)  # (obs, 2H)
    b1 = jnp.concatenate([p["qb1"], p["ib1"]], axis=1).astype(jnp.float32)   # (1, 2H)
    w2 = jnp.stack([p["qw2"], p["iw2"]], axis=0).astype(weight_dtype)        # (2, H, H)
    b2 = jnp.concatenate([p["qb2"], p["ib2"]], axis=0).astype(jnp.float32)   # (2, H)

    # Layer-3 "placement" padding: makes the kernel's packed output free.
    #   q weights -> output lanes [0, A)
    #   i weights -> output lanes [A, 2A) and duplicated at [2A, 3A)
    w3q = jnp.zeros((H, OP), jnp.float32).at[:, 0:A].set(p["qw3"])
    w3i = (jnp.zeros((H, OP), jnp.float32)
           .at[:, A:2 * A].set(p["iw3"])
           .at[:, 2 * A:3 * A].set(p["iw3"]))
    b3q = jnp.zeros((1, OP), jnp.float32).at[:, 0:A].set(p["qb3"])
    b3i = (jnp.zeros((1, OP), jnp.float32)
           .at[:, A:2 * A].set(p["ib3"])
           .at[:, 2 * A:3 * A].set(p["ib3"]))
    w3 = jnp.stack([w3q, w3i], axis=0).astype(weight_dtype)                  # (2, H, OP)
    b3 = jnp.concatenate([b3q, b3i], axis=0)                                 # (2, OP) f32

    return dict(w1=w1, b1=b1, w2=w2, b2=b2, w3=w3, b3=b3,
                n_actions=A, hidden=H, obs_dim=obs, out_lanes=OP)


# --------------------------------------------------------------------------- #
# Wrapper
# --------------------------------------------------------------------------- #
def _choose_tile(B, block_b):
    # >= 2 grid steps whenever B > 8 so ("parallel",) can shard the batch axis
    # across both v7x TensorCores; tb is a multiple of 8 sublanes.
    half = -(-B // 2)                       # ceil(B / 2)
    tb = max(8, min(block_b, _round_up(half, 8)))
    b_pad = _round_up(B, tb)
    return tb, b_pad


def bcq_forward_packed(state, packed, *, block_b=2048):
    """Run the fused BCQ forward; returns the packed (b_pad, OP) f32 slab.

    Per row: lanes [0,A)=q, [A,2A)=log_softmax(i), [2A,3A)=i, rest exact zeros.
    Prefer this entry point when the consumer can index lanes directly — it
    avoids any extra HBM pass over the output."""
    B, obs = state.shape
    A = packed["n_actions"]
    OP = packed["out_lanes"]
    H = packed["hidden"]

    tb, b_pad = _choose_tile(B, block_b)
    if b_pad != B:
        state = jnp.pad(state, ((0, b_pad - B), (0, 0)))
    grid = (b_pad // tb,)

    w1, b1, w2, b2, w3, b3 = (packed[k] for k in ("w1", "b1", "w2", "b2", "w3", "b3"))

    # Advisory cost hint for XLA's scheduler around the custom call.
    flops = 2 * b_pad * (obs * 2 * H + 2 * H * H + 2 * H * OP)
    bytes_accessed = (b_pad * obs * 4
                      + (w1.size + w2.size + w3.size) * 2
                      + (b1.size + b2.size + b3.size) * 4
                      + b_pad * OP * 4)
    cost = pl.CostEstimate(flops=int(flops),
                           transcendentals=int(b_pad * (OP + 1)),
                           bytes_accessed=int(bytes_accessed))

    def run(single_buffer_weights):
        # Grid-invariant weight/bias blocks: single-buffer them when supported
        # (they never change block index, so double-buffering is pure VMEM /
        # DMA-descriptor waste).
        wkw = ({"pipeline_mode": pl.Buffered(1)}
               if (single_buffer_weights and _HAS_PIPELINE_MODE) else {})
        in_specs = [
            pl.BlockSpec((tb, obs), lambda i: (i, 0)),            # state: blocked on B
            pl.BlockSpec(w1.shape, lambda i: (0, 0), **wkw),      # weights resident
            pl.BlockSpec(b1.shape, lambda i: (0, 0), **wkw),
            pl.BlockSpec(w2.shape, lambda i: (0, 0, 0), **wkw),
            pl.BlockSpec(b2.shape, lambda i: (0, 0), **wkw),
            pl.BlockSpec(w3.shape, lambda i: (0, 0, 0), **wkw),
            pl.BlockSpec(b3.shape, lambda i: (0, 0), **wkw),
        ]
        return pl.pallas_call(
            functools.partial(bcq_kernel, n_actions=A),
            grid=grid,
            in_specs=in_specs,
            out_specs=pl.BlockSpec((tb, OP), lambda i: (i, 0)),
            out_shape=jax.ShapeDtypeStruct((b_pad, OP), jnp.float32),
            compiler_params=pltpu.CompilerParams(
                dimension_semantics=("parallel",),
                vmem_limit_bytes=32 * 1024 * 1024),
            cost_estimate=cost,
        )(state, w1, b1, w2, b2, w3, b3)

    if _HAS_PIPELINE_MODE:
        try:
            return run(True)
        except Exception:
            # Fallback for jax versions where Buffered(1) on pallas_call
            # inputs is not lowered; default double-buffering is always fine.
            return run(False)
    return run(False)


def bcq_forward(state, packed, *, block_b=2048):
    """Drop-in (q, log_softmax(i), i) API, each (B, n_actions) f32.

    Unpacks the small slab with a single contiguous [:B, :3A] slice (one pass
    over ~OP*4 bytes/row, 3x less than the previous 3*128-lane layout)."""
    A = packed["n_actions"]
    B = state.shape[0]
    slab = bcq_forward_packed(state, packed, block_b=block_b)
    out = slab[:B, :3 * A]
    return out[:, :A], out[:, A:2 * A], out[:, 2 * A:3 * A]


# --------------------------------------------------------------------------- #
# Reference / init
# --------------------------------------------------------------------------- #
def init_params(key, obs_dim, n_actions, hidden=256):
    """Deterministic synthetic init. Weights stored as (in, out); biases as (1, out)."""
    ks = jax.random.split(key, 12)

    def w(k, shape):
        fan_in = shape[0]
        bound = 1.0 / jnp.sqrt(fan_in)
        return jax.random.uniform(k, shape, jnp.float32, -bound, bound)

    return dict(
        qw1=w(ks[0], (obs_dim, hidden)), qb1=w(ks[1], (1, hidden)) * 0.1,
        qw2=w(ks[2], (hidden, hidden)), qb2=w(ks[3], (1, hidden)) * 0.1,
        qw3=w(ks[4], (hidden, n_actions)), qb3=w(ks[5], (1, n_actions)) * 0.1,
        iw1=w(ks[6], (obs_dim, hidden)), ib1=w(ks[7], (1, hidden)) * 0.1,
        iw2=w(ks[8], (hidden, hidden)), ib2=w(ks[9], (1, hidden)) * 0.1,
        iw3=w(ks[10], (hidden, n_actions)), ib3=w(ks[11], (1, n_actions)) * 0.1,
    )


def bcq_forward_ref(state, p):
    """Pure-JAX f32 reference mirroring the PyTorch forward."""
    q = jax.nn.relu(state @ p["qw1"] + p["qb1"])
    q = jax.nn.relu(q @ p["qw2"] + p["qb2"])
    q = q @ p["qw3"] + p["qb3"]
    i = jax.nn.relu(state @ p["iw1"] + p["ib1"])
    i = jax.nn.relu(i @ p["iw2"] + p["ib2"])
    i = i @ p["iw3"] + p["ib3"]
    return q, jax.nn.log_softmax(i, axis=-1), i


if __name__ == "__main__":
    key = jax.random.PRNGKey(0)
    k_param, k_state = jax.random.split(key)

    obs_dim = 8      # flat observation size
    n_actions = 6    # env.single_action_space.n
    batch = 50       # non-multiple of the tile -> exercises batch padding

    params = init_params(k_param, obs_dim, n_actions)
    packed = pack_params(params)                     # bf16 weights, placed layer-3
    state = jax.random.normal(k_state, (batch, obs_dim), jnp.float32)

    # Defaults: tb = round_up(ceil(50/2), 8) = 32 -> 2-step "parallel" grid.
    q_out, log_imt, i_out = bcq_forward(state, packed)
    jax.block_until_ready((q_out, log_imt, i_out))

    q_ref, log_ref, i_ref = bcq_forward_ref(state, params)
    # bf16 weights / matmul inputs -> compare against the f32 reference loosely.
    assert q_out.shape == (batch, n_actions)
    assert jnp.allclose(q_out, q_ref, atol=3e-2, rtol=3e-2)
    assert jnp.allclose(log_imt, log_ref, atol=3e-2, rtol=3e-2)
    assert jnp.allclose(i_out, i_ref, atol=3e-2, rtol=3e-2)
    assert jnp.all(jnp.isfinite(log_imt))

    # Packed entry point: pad lanes (>= 3A) must be exact zeros (safe to hand
    # the slab to consumers directly, per the correctness review).
    slab = bcq_forward_packed(state, packed)
    jax.block_until_ready(slab)
    assert slab.shape[1] == packed["out_lanes"]
    assert jnp.all(slab[:, 3 * n_actions:] == 0.0)

    print("KERNEL_OK")
</pallas_src>

<mosaic_0001>
module attributes {stable_mosaic.version = 11 : i64} {
  func.func @bcq_kernel(%arg0: i32, %arg1: memref<32x8xf32, #tpu.memory_space<vmem>>, %arg2: memref<8x512xbf16, #tpu.memory_space<vmem>>, %arg3: memref<1x512xf32, #tpu.memory_space<vmem>>, %arg4: memref<2x256x256xbf16, #tpu.memory_space<vmem>>, %arg5: memref<2x256xf32, #tpu.memory_space<vmem>>, %arg6: memref<2x256x128xbf16, #tpu.memory_space<vmem>>, %arg7: memref<2x128xf32, #tpu.memory_space<vmem>>, %arg8: memref<32x128xf32, #tpu.memory_space<vmem>>) attributes {dimension_semantics = [#tpu.dimension_semantics<parallel>], iteration_bounds = array<i64: 2>, scalar_prefetch = 0 : i64, scratch_operands = 0 : i64, tpu.core_type = #tpu.core_type<tc>, window_params = [{transform_indices = @transform_0, window_bounds = array<i64: 32, 8>}, {pipeline_mode = #tpu.pipeline_mode<synchronous>, transform_indices = @transform_1, window_bounds = array<i64: 8, 512>}, {pipeline_mode = #tpu.pipeline_mode<synchronous>, transform_indices = @transform_2, window_bounds = array<i64: 1, 512>}, {pipeline_mode = #tpu.pipeline_mode<synchronous>, transform_indices = @transform_3, window_bounds = array<i64: 2, 256, 256>}, {pipeline_mode = #tpu.pipeline_mode<synchronous>, transform_indices = @transform_4, window_bounds = array<i64: 2, 256>}, {pipeline_mode = #tpu.pipeline_mode<synchronous>, transform_indices = @transform_5, window_bounds = array<i64: 2, 256, 128>}, {pipeline_mode = #tpu.pipeline_mode<synchronous>, transform_indices = @transform_6, window_bounds = array<i64: 2, 128>}, {transform_indices = @transform_7, window_bounds = array<i64: 32, 128>}]} {
    %c0 = arith.constant 0 : index
    %c0_0 = arith.constant 0 : index
    %0 = vector.load %arg1[%c0, %c0_0] : memref<32x8xf32, #tpu.memory_space<vmem>>, vector<32x8xf32>
    %1 = arith.truncf %0 : vector<32x8xf32> to vector<32x8xbf16>
    %c0_1 = arith.constant 0 : index
    %c0_2 = arith.constant 0 : index
    %2 = vector.load %arg3[%c0_1, %c0_2] : memref<1x512xf32, #tpu.memory_space<vmem>>, vector<1x512xf32>
    %c0_3 = arith.constant 0 : index
    %c0_4 = arith.constant 0 : index
    %3 = vector.load %arg5[%c0_3, %c0_4] : memref<2x256xf32, #tpu.memory_space<vmem>>, vector<1x256xf32>
    %c1 = arith.constant 1 : index
    %c0_5 = arith.constant 0 : index
    %4 = vector.load %arg5[%c1, %c0_5] : memref<2x256xf32, #tpu.memory_space<vmem>>, vector<1x256xf32>
    %c0_6 = arith.constant 0 : index
    %c0_7 = arith.constant 0 : index
    %5 = vector.load %arg7[%c0_6, %c0_7] : memref<2x128xf32, #tpu.memory_space<vmem>>, vector<1x128xf32>
    %c1_8 = arith.constant 1 : index
    %c0_9 = arith.constant 0 : index
    %6 = vector.load %arg7[%c1_8, %c0_9] : memref<2x128xf32, #tpu.memory_space<vmem>>, vector<1x128xf32>
    %c0_10 = arith.constant 0 : index
    %c0_11 = arith.constant 0 : index
    %7 = vector.load %arg2[%c0_10, %c0_11] : memref<8x512xbf16, #tpu.memory_space<vmem>>, vector<8x512xbf16>
    %cst = arith.constant dense<0.000000e+00> : vector<32x512xf32>
    %8 = tpu.matmul %1, %7, %cst {dimension_numbers = #tpu.dot_dimension_numbers<[1], [0], [0], [1], [0, 0, 1, 1], [], []>} : vector<32x8xbf16>, vector<8x512xbf16>, vector<32x512xf32> -> vector<32x512xf32>
    %9 = vector.broadcast %2 : vector<1x512xf32> to vector<32x512xf32>
    %10 = arith.addf %8, %9 : vector<32x512xf32>
    %cst_12 = arith.constant 0.000000e+00 : f32
    %11 = vector.broadcast %cst_12 : f32 to vector<32x512xf32>
    %12 = arith.maximumf %10, %11 : vector<32x512xf32>
    %13 = vector.extract_strided_slice %12 {offsets = [0, 0], sizes = [32, 256], strides = [1, 1]} : vector<32x512xf32> to vector<32x256xf32>
    %14 = arith.truncf %13 : vector<32x256xf32> to vector<32x256xbf16>
    %15 = vector.extract_strided_slice %12 {offsets = [0, 256], sizes = [32, 256], strides = [1, 1]} : vector<32x512xf32> to vector<32x256xf32>
    %16 = arith.truncf %15 : vector<32x256xf32> to vector<32x256xbf16>
    %c0_13 = arith.constant 0 : index
    %c0_14 = arith.constant 0 : index
    %c0_15 = arith.constant 0 : index
    %17 = vector.load %arg4[%c0_13, %c0_14, %c0_15] : memref<2x256x256xbf16, #tpu.memory_space<vmem>>, vector<1x256x256xbf16>
    %18 = vector.shape_cast %17 : vector<1x256x256xbf16> to vector<256x256xbf16>
    %cst_16 = arith.constant dense<0.000000e+00> : vector<32x256xf32>
    %19 = tpu.matmul %14, %18, %cst_16 {dimension_numbers = #tpu.dot_dimension_numbers<[1], [0], [0], [1], [0, 0, 1, 1], [], []>} : vector<32x256xbf16>, vector<256x256xbf16>, vector<32x256xf32> -> vector<32x256xf32>
    %20 = vector.broadcast %3 : vector<1x256xf32> to vector<32x256xf32>
    %21 = arith.addf %19, %20 : vector<32x256xf32>
    %cst_17 = arith.constant 0.000000e+00 : f32
    %22 = vector.broadcast %cst_17 : f32 to vector<32x256xf32>
    %23 = arith.maximumf %21, %22 : vector<32x256xf32>
    %24 = arith.truncf %23 : vector<32x256xf32> to vector<32x256xbf16>
    %c1_18 = arith.constant 1 : index
    %c0_19 = arith.constant 0 : index
    %c0_20 = arith.constant 0 : index
    %25 = vector.load %arg4[%c1_18, %c0_19, %c0_20] : memref<2x256x256xbf16, #tpu.memory_space<vmem>>, vector<1x256x256xbf16>
    %26 = vector.shape_cast %25 : vector<1x256x256xbf16> to vector<256x256xbf16>
    %cst_21 = arith.constant dense<0.000000e+00> : vector<32x256xf32>
    %27 = tpu.matmul %16, %26, %cst_21 {dimension_numbers = #tpu.dot_dimension_numbers<[1], [0], [0], [1], [0, 0, 1, 1], [], []>} : vector<32x256xbf16>, vector<256x256xbf16>, vector<32x256xf32> -> vector<32x256xf32>
    %28 = vector.broadcast %4 : vector<1x256xf32> to vector<32x256xf32>
    %29 = arith.addf %27, %28 : vector<32x256xf32>
    %cst_22 = arith.constant 0.000000e+00 : f32
    %30 = vector.broadcast %cst_22 : f32 to vector<32x256xf32>
    %31 = arith.maximumf %29, %30 : vector<32x256xf32>
    %32 = arith.truncf %31 : vector<32x256xf32> to vector<32x256xbf16>
    %c0_23 = arith.constant 0 : index
    %c0_24 = arith.constant 0 : index
    %c0_25 = arith.constant 0 : index
    %33 = vector.load %arg6[%c0_23, %c0_24, %c0_25] : memref<2x256x128xbf16, #tpu.memory_space<vmem>>, vector<1x256x128xbf16>
    %34 = vector.shape_cast %33 : vector<1x256x128xbf16> to vector<256x128xbf16>
    %cst_26 = arith.constant dense<0.000000e+00> : vector<32x128xf32>
    %35 = tpu.matmul %24, %34, %cst_26 {dimension_numbers = #tpu.dot_dimension_numbers<[1], [0], [0], [1], [0, 0, 1, 1], [], []>} : vector<32x256xbf16>, vector<256x128xbf16>, vector<32x128xf32> -> vector<32x128xf32>
    %36 = vector.broadcast %5 : vector<1x128xf32> to vector<32x128xf32>
    %37 = arith.addf %35, %36 : vector<32x128xf32>
    %c1_27 = arith.constant 1 : index
    %c0_28 = arith.constant 0 : index
    %c0_29 = arith.constant 0 : index
    %38 = vector.load %arg6[%c1_27, %c0_28, %c0_29] : memref<2x256x128xbf16, #tpu.memory_space<vmem>>, vector<1x256x128xbf16>
    %39 = vector.shape_cast %38 : vector<1x256x128xbf16> to vector<256x128xbf16>
    %cst_30 = arith.constant dense<0.000000e+00> : vector<32x128xf32>
    %40 = tpu.matmul %32, %39, %cst_30 {dimension_numbers = #tpu.dot_dimension_numbers<[1], [0], [0], [1], [0, 0, 1, 1], [], []>} : vector<32x256xbf16>, vector<256x128xbf16>, vector<32x128xf32> -> vector<32x128xf32>
    %41 = vector.broadcast %6 : vector<1x128xf32> to vector<32x128xf32>
    %42 = arith.addf %40, %41 : vector<32x128xf32>
    %43 = tpu.iota {dimensions = array<i32: 1>} : vector<32x128xi32>
    %c6_i32 = arith.constant 6 : i32
    %44 = vector.broadcast %c6_i32 : i32 to vector<32x128xi32>
    %45 = arith.cmpi sge, %43, %44 : vector<32x128xi32>
    %c12_i32 = arith.constant 12 : i32
    %46 = vector.broadcast %c12_i32 : i32 to vector<32x128xi32>
    %47 = arith.cmpi slt, %43, %46 : vector<32x128xi32>
    %48 = arith.andi %45, %47 : vector<32x128xi1>
    %cst_31 = arith.constant -1.000000e+30 : f32
    %49 = vector.broadcast %cst_31 : f32 to vector<32x128xf32>
    %50 = arith.select %48, %42, %49 : vector<32x128xi1>, vector<32x128xf32>
    %cst_32 = arith.constant dense<0xFF800000> : vector<32xf32>
    %51 = vector.multi_reduction <maximumf>, %50, %cst_32 [1] : vector<32x128xf32> to vector<32xf32>
    %52 = vector.shape_cast %51 : vector<32xf32> to vector<32x1xf32>
    %53 = vector.broadcast %52 : vector<32x1xf32> to vector<32x128xf32>
    %54 = arith.subf %50, %53 : vector<32x128xf32>
    %55 = math.exp %54 : vector<32x128xf32>
    %cst_33 = arith.constant dense<0.000000e+00> : vector<32xf32>
    %56 = vector.multi_reduction <add>, %55, %cst_33 [1] : vector<32x128xf32> to vector<32xf32>
    %57 = vector.shape_cast %56 : vector<32xf32> to vector<32x1xf32>
    %58 = math.log %57 : vector<32x1xf32>
    %59 = vector.broadcast %58 : vector<32x1xf32> to vector<32x128xf32>
    %60 = arith.subf %54, %59 : vector<32x128xf32>
    %c6_i32_34 = arith.constant 6 : i32
    %61 = vector.broadcast %c6_i32_34 : i32 to vector<32x128xi32>
    %62 = arith.cmpi slt, %43, %61 : vector<32x128xi32>
    %c12_i32_35 = arith.constant 12 : i32
    %63 = vector.broadcast %c12_i32_35 : i32 to vector<32x128xi32>
    %64 = arith.cmpi slt, %43, %63 : vector<32x128xi32>
    %65 = arith.select %64, %60, %42 : vector<32x128xi1>, vector<32x128xf32>
    %66 = arith.select %62, %37, %65 : vector<32x128xi1>, vector<32x128xf32>
    %c0_36 = arith.constant 0 : index
    %c0_37 = arith.constant 0 : index
    %67 = vector.load %arg8[%c0_36, %c0_37] : memref<32x128xf32, #tpu.memory_space<vmem>>, vector<32x128xf32>
    tpu.vector_store %arg8[%c0_36, %c0_37], %66 {strides = array<i32>} : memref<32x128xf32, #tpu.memory_space<vmem>>, vector<32x128xf32>,
    return
  }
  func.func @transform_0(%arg0: i32) -> (i32, i32) {
    %c0_i32 = arith.constant 0 : i32
    %c0_i32_0 = arith.constant 0 : i32
    return %arg0, %c0_i32 : i32, i32
  }
  func.func @transform_1(%arg0: i32) -> (i32, i32) {
    %c0_i32 = arith.constant 0 : i32
    %c0_i32_0 = arith.constant 0 : i32
    %c0_i32_1 = arith.constant 0 : i32
    return %c0_i32, %c0_i32_0 : i32, i32
  }
  func.func @transform_2(%arg0: i32) -> (i32, i32) {
    %c0_i32 = arith.constant 0 : i32
    %c0_i32_0 = arith.constant 0 : i32
    %c0_i32_1 = arith.constant 0 : i32
    return %c0_i32, %c0_i32_0 : i32, i32
  }
  func.func @transform_3(%arg0: i32) -> (i32, i32, i32) {
    %c0_i32 = arith.constant 0 : i32
    %c0_i32_0 = arith.constant 0 : i32
    %c0_i32_1 = arith.constant 0 : i32
    %c0_i32_2 = arith.constant 0 : i32
    return %c0_i32, %c0_i32_0, %c0_i32_1 : i32, i32, i32
  }
  func.func @transform_4(%arg0: i32) -> (i32, i32) {
    %c0_i32 = arith.constant 0 : i32
    %c0_i32_0 = arith.constant 0 : i32
    %c0_i32_1 = arith.constant 0 : i32
    return %c0_i32, %c0_i32_0 : i32, i32
  }
  func.func @transform_5(%arg0: i32) -> (i32, i32, i32) {
    %c0_i32 = arith.constant 0 : i32
    %c0_i32_0 = arith.constant 0 : i32
    %c0_i32_1 = arith.constant 0 : i32
    %c0_i32_2 = arith.constant 0 : i32
    return %c0_i32, %c0_i32_0, %c0_i32_1 : i32, i32, i32
  }
  func.func @transform_6(%arg0: i32) -> (i32, i32) {
    %c0_i32 = arith.constant 0 : i32
    %c0_i32_0 = arith.constant 0 : i32
    %c0_i32_1 = arith.constant 0 : i32
    return %c0_i32, %c0_i32_0 : i32, i32
  }
  func.func @transform_7(%arg0: i32) -> (i32, i32) {
    %c0_i32 = arith.constant 0 : i32
    %c0_i32_0 = arith.constant 0 : i32
    return %arg0, %c0_i32 : i32, i32
  }
}

module attributes {stable_mosaic.version = 11 : i64} {
  func.func @bcq_kernel(%arg0: i32, %arg1: memref<32x8xf32, #tpu.memory_space<vmem>>, %arg2: memref<8x512xbf16, #tpu.memory_space<vmem>>, %arg3: memref<1x512xf32, #tpu.memory_space<vmem>>, %arg4: memref<2x256x256xbf16, #tpu.memory_space<vmem>>, %arg5: memref<2x256xf32, #tpu.memory_space<vmem>>, %arg6: memref<2x256x128xbf16, #tpu.memory_space<vmem>>, %arg7: memref<2x128xf32, #tpu.memory_space<vmem>>, %arg8: memref<32x128xf32, #tpu.memory_space<vmem>>) attributes {dimension_semantics = [#tpu.dimension_semantics<parallel>], iteration_bounds = array<i64: 2>, scalar_prefetch = 0 : i64, scratch_operands = 0 : i64, tpu.core_type = #tpu.core_type<tc>, window_params = [{transform_indices = @transform_0, window_bounds = array<i64: 32, 8>}, {pipeline_mode = #tpu.pipeline_mode<synchronous>, transform_indices = @transform_1, window_bounds = array<i64: 8, 512>}, {pipeline_mode = #tpu.pipeline_mode<synchronous>, transform_indices = @transform_2, window_bounds = array<i64: 1, 512>}, {pipeline_mode = #tpu.pipeline_mode<synchronous>, transform_indices = @transform_3, window_bounds = array<i64: 2, 256, 256>}, {pipeline_mode = #tpu.pipeline_mode<synchronous>, transform_indices = @transform_4, window_bounds = array<i64: 2, 256>}, {pipeline_mode = #tpu.pipeline_mode<synchronous>, transform_indices = @transform_5, window_bounds = array<i64: 2, 256, 128>}, {pipeline_mode = #tpu.pipeline_mode<synchronous>, transform_indices = @transform_6, window_bounds = array<i64: 2, 128>}, {transform_indices = @transform_7, window_bounds = array<i64: 32, 128>}]} {
    %c0 = arith.constant 0 : index
    %c0_0 = arith.constant 0 : index
    %0 = vector.load %arg1[%c0, %c0_0] : memref<32x8xf32, #tpu.memory_space<vmem>>, vector<32x8xf32>
    %1 = arith.truncf %0 : vector<32x8xf32> to vector<32x8xbf16>
    %c0_1 = arith.constant 0 : index
    %c0_2 = arith.constant 0 : index
    %2 = vector.load %arg3[%c0_1, %c0_2] : memref<1x512xf32, #tpu.memory_space<vmem>>, vector<1x512xf32>
    %c0_3 = arith.constant 0 : index
    %c0_4 = arith.constant 0 : index
    %3 = vector.load %arg5[%c0_3, %c0_4] : memref<2x256xf32, #tpu.memory_space<vmem>>, vector<1x256xf32>
    %c1 = arith.constant 1 : index
    %c0_5 = arith.constant 0 : index
    %4 = vector.load %arg5[%c1, %c0_5] : memref<2x256xf32, #tpu.memory_space<vmem>>, vector<1x256xf32>
    %c0_6 = arith.constant 0 : index
    %c0_7 = arith.constant 0 : index
    %5 = vector.load %arg7[%c0_6, %c0_7] : memref<2x128xf32, #tpu.memory_space<vmem>>, vector<1x128xf32>
    %c1_8 = arith.constant 1 : index
    %c0_9 = arith.constant 0 : index
    %6 = vector.load %arg7[%c1_8, %c0_9] : memref<2x128xf32, #tpu.memory_space<vmem>>, vector<1x128xf32>
    %c0_10 = arith.constant 0 : index
    %c0_11 = arith.constant 0 : index
    %7 = vector.load %arg2[%c0_10, %c0_11] : memref<8x512xbf16, #tpu.memory_space<vmem>>, vector<8x512xbf16>
    %cst = arith.constant dense<0.000000e+00> : vector<32x512xf32>
    %8 = tpu.matmul %1, %7, %cst {dimension_numbers = #tpu.dot_dimension_numbers<[1], [0], [0], [1], [0, 0, 1, 1], [], []>} : vector<32x8xbf16>, vector<8x512xbf16>, vector<32x512xf32> -> vector<32x512xf32>
    %9 = vector.broadcast %2 : vector<1x512xf32> to vector<32x512xf32>
    %10 = arith.addf %8, %9 : vector<32x512xf32>
    %cst_12 = arith.constant 0.000000e+00 : f32
    %11 = vector.broadcast %cst_12 : f32 to vector<32x512xf32>
    %12 = arith.maximumf %10, %11 : vector<32x512xf32>
    %13 = vector.extract_strided_slice %12 {offsets = [0, 0], sizes = [32, 256], strides = [1, 1]} : vector<32x512xf32> to vector<32x256xf32>
    %14 = arith.truncf %13 : vector<32x256xf32> to vector<32x256xbf16>
    %15 = vector.extract_strided_slice %12 {offsets = [0, 256], sizes = [32, 256], strides = [1, 1]} : vector<32x512xf32> to vector<32x256xf32>
    %16 = arith.truncf %15 : vector<32x256xf32> to vector<32x256xbf16>
    %c0_13 = arith.constant 0 : index
    %c0_14 = arith.constant 0 : index
    %c0_15 = arith.constant 0 : index
    %17 = vector.load %arg4[%c0_13, %c0_14, %c0_15] : memref<2x256x256xbf16, #tpu.memory_space<vmem>>, vector<1x256x256xbf16>
    %18 = vector.shape_cast %17 : vector<1x256x256xbf16> to vector<256x256xbf16>
    %cst_16 = arith.constant dense<0.000000e+00> : vector<32x256xf32>
    %19 = tpu.matmul %14, %18, %cst_16 {dimension_numbers = #tpu.dot_dimension_numbers<[1], [0], [0], [1], [0, 0, 1, 1], [], []>} : vector<32x256xbf16>, vector<256x256xbf16>, vector<32x256xf32> -> vector<32x256xf32>
    %20 = vector.broadcast %3 : vector<1x256xf32> to vector<32x256xf32>
    %21 = arith.addf %19, %20 : vector<32x256xf32>
    %cst_17 = arith.constant 0.000000e+00 : f32
    %22 = vector.broadcast %cst_17 : f32 to vector<32x256xf32>
    %23 = arith.maximumf %21, %22 : vector<32x256xf32>
    %24 = arith.truncf %23 : vector<32x256xf32> to vector<32x256xbf16>
    %c1_18 = arith.constant 1 : index
    %c0_19 = arith.constant 0 : index
    %c0_20 = arith.constant 0 : index
    %25 = vector.load %arg4[%c1_18, %c0_19, %c0_20] : memref<2x256x256xbf16, #tpu.memory_space<vmem>>, vector<1x256x256xbf16>
    %26 = vector.shape_cast %25 : vector<1x256x256xbf16> to vector<256x256xbf16>
    %cst_21 = arith.constant dense<0.000000e+00> : vector<32x256xf32>
    %27 = tpu.matmul %16, %26, %cst_21 {dimension_numbers = #tpu.dot_dimension_numbers<[1], [0], [0], [1], [0, 0, 1, 1], [], []>} : vector<32x256xbf16>, vector<256x256xbf16>, vector<32x256xf32> -> vector<32x256xf32>
    %28 = vector.broadcast %4 : vector<1x256xf32> to vector<32x256xf32>
    %29 = arith.addf %27, %28 : vector<32x256xf32>
    %cst_22 = arith.constant 0.000000e+00 : f32
    %30 = vector.broadcast %cst_22 : f32 to vector<32x256xf32>
    %31 = arith.maximumf %29, %30 : vector<32x256xf32>
    %32 = arith.truncf %31 : vector<32x256xf32> to vector<32x256xbf16>
    %c0_23 = arith.constant 0 : index
    %c0_24 = arith.constant 0 : index
    %c0_25 = arith.constant 0 : index
    %33 = vector.load %arg6[%c0_23, %c0_24, %c0_25] : memref<2x256x128xbf16, #tpu.memory_space<vmem>>, vector<1x256x128xbf16>
    %34 = vector.shape_cast %33 : vector<1x256x128xbf16> to vector<256x128xbf16>
    %cst_26 = arith.constant dense<0.000000e+00> : vector<32x128xf32>
    %35 = tpu.matmul %24, %34, %cst_26 {dimension_numbers = #tpu.dot_dimension_numbers<[1], [0], [0], [1], [0, 0, 1, 1], [], []>} : vector<32x256xbf16>, vector<256x128xbf16>, vector<32x128xf32> -> vector<32x128xf32>
    %36 = vector.broadcast %5 : vector<1x128xf32> to vector<32x128xf32>
    %37 = arith.addf %35, %36 : vector<32x128xf32>
    %c1_27 = arith.constant 1 : index
    %c0_28 = arith.constant 0 : index
    %c0_29 = arith.constant 0 : index
    %38 = vector.load %arg6[%c1_27, %c0_28, %c0_29] : memref<2x256x128xbf16, #tpu.memory_space<vmem>>, vector<1x256x128xbf16>
    %39 = vector.shape_cast %38 : vector<1x256x128xbf16> to vector<256x128xbf16>
    %cst_30 = arith.constant dense<0.000000e+00> : vector<32x128xf32>
    %40 = tpu.matmul %32, %39, %cst_30 {dimension_numbers = #tpu.dot_dimension_numbers<[1], [0], [0], [1], [0, 0, 1, 1], [], []>} : vector<32x256xbf16>, vector<256x128xbf16>, vector<32x128xf32> -> vector<32x128xf32>
    %41 = vector.broadcast %6 : vector<1x128xf32> to vector<32x128xf32>
    %42 = arith.addf %40, %41 : vector<32x128xf32>
    %43 = tpu.iota {dimensions = array<i32: 1>} : vector<32x128xi32>
    %c6_i32 = arith.constant 6 : i32
    %44 = vector.broadcast %c6_i32 : i32 to vector<32x128xi32>
    %45 = arith.cmpi sge, %43, %44 : vector<32x128xi32>
    %c12_i32 = arith.constant 12 : i32
    %46 = vector.broadcast %c12_i32 : i32 to vector<32x128xi32>
    %47 = arith.cmpi slt, %43, %46 : vector<32x128xi32>
    %48 = arith.andi %45, %47 : vector<32x128xi1>
    %cst_31 = arith.constant -1.000000e+30 : f32
    %49 = vector.broadcast %cst_31 : f32 to vector<32x128xf32>
    %50 = arith.select %48, %42, %49 : vector<32x128xi1>, vector<32x128xf32>
    %cst_32 = arith.constant dense<0xFF800000> : vector<32xf32>
    %51 = vector.multi_reduction <maximumf>, %50, %cst_32 [1] : vector<32x128xf32> to vector<32xf32>
    %52 = vector.shape_cast %51 : vector<32xf32> to vector<32x1xf32>
    %53 = vector.broadcast %52 : vector<32x1xf32> to vector<32x128xf32>
    %54 = arith.subf %50, %53 : vector<32x128xf32>
    %55 = math.exp %54 : vector<32x128xf32>
    %cst_33 = arith.constant dense<0.000000e+00> : vector<32xf32>
    %56 = vector.multi_reduction <add>, %55, %cst_33 [1] : vector<32x128xf32> to vector<32xf32>
    %57 = vector.shape_cast %56 : vector<32xf32> to vector<32x1xf32>
    %58 = math.log %57 : vector<32x1xf32>
    %59 = vector.broadcast %58 : vector<32x1xf32> to vector<32x128xf32>
    %60 = arith.subf %54, %59 : vector<32x128xf32>
    %c6_i32_34 = arith.constant 6 : i32
    %61 = vector.broadcast %c6_i32_34 : i32 to vector<32x128xi32>
    %62 = arith.cmpi slt, %43, %61 : vector<32x128xi32>
    %c12_i32_35 = arith.constant 12 : i32
    %63 = vector.broadcast %c12_i32_35 : i32 to vector<32x128xi32>
    %64 = arith.cmpi slt, %43, %63 : vector<32x128xi32>
    %65 = arith.select %64, %60, %42 : vector<32x128xi1>, vector<32x128xf32>
    %66 = arith.select %62, %37, %65 : vector<32x128xi1>, vector<32x128xf32>
    %c0_36 = arith.constant 0 : index
    %c0_37 = arith.constant 0 : index
    %67 = vector.load %arg8[%c0_36, %c0_37] : memref<32x128xf32, #tpu.memory_space<vmem>>, vector<32x128xf32>
    tpu.vector_store %arg8[%c0_36, %c0_37], %66 {strides = array<i32>} : memref<32x128xf32, #tpu.memory_space<vmem>>, vector<32x128xf32>,
    return
  }
  func.func @transform_0(%arg0: i32) -> (i32, i32) {
    %c0_i32 = arith.constant 0 : i32
    %c0_i32_0 = arith.constant 0 : i32
    return %arg0, %c0_i32 : i32, i32
  }
  func.func @transform_1(%arg0: i32) -> (i32, i32) {
    %c0_i32 = arith.constant 0 : i32
    %c0_i32_0 = arith.constant 0 : i32
    %c0_i32_1 = arith.constant 0 : i32
    return %c0_i32, %c0_i32_0 : i32, i32
  }
  func.func @transform_2(%arg0: i32) -> (i32, i32) {
    %c0_i32 = arith.constant 0 : i32
    %c0_i32_0 = arith.constant 0 : i32
    %c0_i32_1 = arith.constant 0 : i32
    return %c0_i32, %c0_i32_0 : i32, i32
  }
  func.func @transform_3(%arg0: i32) -> (i32, i32, i32) {
    %c0_i32 = arith.constant 0 : i32
    %c0_i32_0 = arith.constant 0 : i32
    %c0_i32_1 = arith.constant 0 : i32
    %c0_i32_2 = arith.constant 0 : i32
    return %c0_i32, %c0_i32_0, %c0_i32_1 : i32, i32, i32
  }
  func.func @transform_4(%arg0: i32) -> (i32, i32) {
    %c0_i32 = arith.constant 0 : i32
    %c0_i32_0 = arith.constant 0 : i32
    %c0_i32_1 = arith.constant 0 : i32
    return %c0_i32, %c0_i32_0 : i32, i32
  }
  func.func @transform_5(%arg0: i32) -> (i32, i32, i32) {
    %c0_i32 = arith.constant 0 : i32
    %c0_i32_0 = arith.constant 0 : i32
    %c0_i32_1 = arith.constant 0 : i32
    %c0_i32_2 = arith.constant 0 : i32
    return %c0_i32, %c0_i32_0, %c0_i32_1 : i32, i32, i32
  }
  func.func @transform_6(%arg0: i32) -> (i32, i32) {
    %c0_i32 = arith.constant 0 : i32
    %c0_i32_0 = arith.constant 0 : i32
    %c0_i32_1 = arith.constant 0 : i32
    return %c0_i32, %c0_i32_0 : i32, i32
  }
  func.func @transform_7(%arg0: i32) -> (i32, i32) {
    %c0_i32 = arith.constant 0 : i32
    %c0_i32_0 = arith.constant 0 : i32
    return %arg0, %c0_i32 : i32, i32
  }
}

</mosaic_0001>

<bundles_post_ra>
// kernel: tpu_custom_call.1
= control target key start
LH: loop header
LB: loop body
LE: loop exit
PB: predicated region body
PF: predicated region fallthrough
CT: control target
= control target key end

     0   :  { %12 = vsyncpa [#allocation3], 0  ;;  %s2439_s0 = inlined_call_operand.vmem [shape: f32[64,8], index: 0, kind: input, shape index: {}]   ;;  %s2440_s1 = inlined_call_operand.vmem [shape: bf16[8,512], index: 1, kind: input, shape index: {}]   ;;  %s2441_s2 = inlined_call_operand.vmem [shape: f32[1,512], index: 2, kind: input, shape index: {}]   ;;  %s2442_s3 = inlined_call_operand.hbm [shape: bf16[2,256,256], index: 3, kind: input, shape index: {}]   ;;  %s2443_s4 = inlined_call_operand.vmem [shape: f32[2,256], index: 4, kind: input, shape index: {}]   ;;  %s2444_s5 = inlined_call_operand.hbm [shape: bf16[2,256,128], index: 5, kind: input, shape index: {}]   ;;  %s2445_s6 = inlined_call_operand.vmem [shape: f32[2,128], index: 6, kind: input, shape index: {}]   ;;  %s2446_s7 = inlined_call_operand.hbm [shape: f32[64,128], index: 7, kind: output, shape index: {}]  }
   0x1   :  { %13 = vsyncpa [#allocation6], 0 }
   0x2   :  { %14 = vsyncpa [#allocation4], 0 }
   0x3   :  { %16 = vsyncpa [#allocation4 + $0x1], 0  ;;  %s2141_s24 = smov 0   ;;  %s2143_s25 = smov 0  }
   0x4   :  { %s2145_s26 = smov 0   ;;  %s2147_s27 = smov 0  }
   0x5 LB: > { %s2162_s28 = sadd.s32 4294967295, %s2089_s27   ;;  %s1566_s29 = sadd.s32 4294967294, %s2089_s27   ;;  %s2089_s27 = sphi %s2147_s27, %s2468_s27   ;;  %s2085_s26 = sphi %s2145_s26, %s2467_s26   ;;  %s2081_s25 = sphi %s2143_s25, %s2466_s25   ;;  %s2077_s24 = sphi %s2141_s24, %s2465_s24  }
   0x6   : > { %s2166_s30 = sadd.s32 1, %s2089_s27   ;;  %s181_s8 = sadd.s32 1, %s2085_s26 }
   0x7   : > { %s178_s9 = ssub.s32 %s2089_s27, %s2166_s30  ;;  %p191_p0 = scmp.ne.s32.totalorder %s2085_s26, %s2081_s25 }
   0x8   : > { %p179_p1 = scmp.eq.s32.totalorder %s178_s9, 0  ;;  %p192_p2 = scmp.eq.s32.totalorder %s2162_s28, 1 }
   0x9   : > { %p197_p3 = scmp.ne.s32.totalorder %s2081_s25, %s2077_s24  ;;  %p198_p4 = scmp.eq.s32.totalorder %s1566_s29, 1 }
   0xa   : > { %s2177_s10 = scalar_select %p179_p1, %s2085_s26, %s181_s8  }
   0xb   : > { %p2179_p5 = por %p192_p2, %p191_p0  ;;  %p2183_p6 = por %p198_p4, %p197_p3 }
   0xc   : > { %2450 = sst [smem:[#allocation11_spill]] %s2177_s10  ;;  %p1567_p7 = scmp.ge.s32.totalorder %s2089_s27, 1 }
   0xd   : > { %s2451_s11 = scalar_select %p2179_p5, 1, 0 }
   0xe   : > { %s2452_s12 = scalar_select %p2183_p6, 1, 0 }
   0xf   : > { %p205_p8 = scmp.lt.s32.totalorder %s2089_s27, 3  ;;  %p2447_p9 = scmp.eq.s32.totalorder %s2162_s28, 0 }
  0x10   : > { %s2091_s14 = smov [#allocation2]   ;;  %s2092_s17 = smov [#allocation5]  }
  0x11   : > { %p2190_p10 = pnand %p1567_p7, %p205_p8  ;;  %s223_s15 = sshll.u32 %s2091_s14, 4  ;;  %s224_s15 = int_to_ptr.vmem [resolvable:$true] %s223_s15 }
  0x12   : > { %s239_s18 = sshll.u32 %s2092_s17, 4  ;;  %s1963_s21 = scalar_lea.hbm %s2442_s3, 8192  ;;  %s2202_s18 = int_to_ptr.vmem [resolvable:$true] %s239_s18 }
  0x13   : > { %s2453_s13 = scalar_select %p2190_p10, 1, 0 }
  0x14   : > { %p1758_p11 = pneg %p2190_p10  ;;  %p1964_p13 = scmp.ne.s32.totalorder %s2442_s3, %s1963_s21 }
  0x15   : > { %p1970_p3 = scmp.lt.u32.totalorder %s1963_s21, %s2442_s3 }
  0x16   : > { %p2198_p12 = pnand %p2447_p9, %p1758_p11 }
  0x18   : > { %p1965_p0 = pneg %p2198_p12 }
  0x1a   : > { %p1966_p1 = pnand %p1965_p0, %p1964_p13 }
  0x1c   : > { %p1967_p2 = pneg %p1966_p1 }
  0x1e   : > { %p1972_p4 = pnand %p1970_p3, %p1967_p2 }
  0x20   : > { %1975 = shalt.err (!%p1972_p4)
}
  0x21   : > { %s1976_s9 = scalar_lea.vmem %s224_s15, 8192  ;;  %p1984_p9 = scmp.lt.s32.totalorder %s224_s15, %s224_s15 }
  0x22   : > { %p1977_p7 = scmp.ne.s32.totalorder %s224_s15, %s1976_s9  ;;  %p1985_p6 = scmp.lt.s32.totalorder %s1976_s9, %s1976_s9 }
  0x24   : > { %p1979_p8 = pnand %p1977_p7, %p1965_p0  ;;  %p1986_p5 = por %p1985_p6, %p1984_p9 }
  0x26   : > { %p1980_p11 = pneg %p1979_p8 }
  0x28   : > { %p1987_p10 = pnand %p1986_p5, %p1980_p11 }
  0x2a   : > { %1990 = shalt.err (!%p1987_p10)
}
  0x2b   : > { %s2093_s14 = smov 128   ;;  %s2094_s17 = smov 8  }
  0x2c   : > { %1761 = dma.hbm_to_vmem [thread:$0]  (!%p2198_p12), %s2442_s3, 8192, %s224_s15, [#allocation3], %s2093_s14, %s2093_s14, %s2094_s17  }
  0x2d   : > { %s1991_s23 = scalar_lea.hbm %s2444_s5, 4096 }
  0x2e   : > { %p1992_p13 = scmp.ne.s32.totalorder %s2444_s5, %s1991_s23  ;;  %p1998_p9 = scmp.lt.u32.totalorder %s1991_s23, %s2444_s5 }
  0x30   : > { %p1994_p5 = pnand %p1992_p13, %p1965_p0 }
  0x32   : > { %p1995_p6 = pneg %p1994_p5 }
  0x34   : > { %p2000_p10 = pnand %p1998_p9, %p1995_p6 }
  0x36   : > { %2003 = shalt.err (!%p2000_p10)
}
  0x37   : > { %s2004_s15 = scalar_lea.vmem %s2202_s18, 4096  ;;  %p2012_p4 = scmp.lt.s32.totalorder %s2202_s18, %s2202_s18 }
  0x38   : > { %p2005_p1 = scmp.ne.s32.totalorder %s2202_s18, %s2004_s15  ;;  %p2013_p7 = scmp.lt.s32.totalorder %s2004_s15, %s2004_s15 }
  0x3a   : > { %p2007_p2 = pnand %p2005_p1, %p1965_p0  ;;  %p2014_p8 = por %p2013_p7, %p2012_p4 }
  0x3c   : > { %p2008_p3 = pneg %p2007_p2 }
  0x3e   : > { %p2015_p11 = pnand %p2014_p8, %p2008_p3 }
  0x40   : > { %2018 = shalt.err (!%p2015_p11)
}
  0x41   : > { %s2095_s10 = smov 64   ;;  %s2096_s14 = smov 4  }
  0x42   : > { %1764 = dma.hbm_to_vmem [thread:$0]  (!%p2198_p12), %s2444_s5, 4096, %s2202_s18, [#allocation6], %s2095_s10, %s2095_s10, %s2096_s14  }
  0x43   : > { %p2455_p13 = scmp.ne.s32.totalorder %s2453_s13, 0 }
  0x44   : > { %p2456_p0 = scmp.eq.s32.totalorder (!%p2455_p13), %s2162_s28, 0 }
  0x45   : > { %267 = sbr.rel (%p2455_p13) target bundleno = 1094 (0x446), region = 48 }
  0x4c   : > { %2064 = dma.done.wait (%p2456_p0), [#allocation3], 8192   ;;  %p2457_p5 = pmov %p2456_p0 }
  0x4d   : > { %p2458_p6 = pmov %p2456_p0 }
  0x4e   : > { %2066 = vsyncadd (%p2457_p5), [#allocation3], 4294959104 }
  0x4f   : > { %2068 = dma.done.wait (%p2458_p6), [#allocation6], 4096   ;;  %p2459_p9 = pmov %p2456_p0 }
  0x50   : > { %s1575_s16 = sshll.u32 %s2162_s28, 2  ;;  %v2097_v0 = vmov 0   ;;  %v324_v1 = vld [vmem:[%s2440_s1 + $0x8] sm:$0xff]  ;;  %vm363_vm0 = vcmask 1043456   ;;  %vm356_vm1 = vcmask 64512   ;;  %v323_v43 = vld [vmem:[%s2440_s1] sm:$0xff]  ;;  %v326_v48 = vlaneseq }
  0x51   : > { %2070 = vsyncadd (%p2459_p9), [#allocation6], 4294963200  ;;  %461 = vmatprep.mubr.bf16.mxu1 %v2097_v0  ;;  %p304_p12 = scmp.lt.s32.totalorder %s1575_s16, 7  ;;  %408 = vmatprep.mubr.bf16.mxu0 %v2097_v0  ;;  %v1581_v4 = vcombine.high %v324_v1, %v324_v1  ;;  %v1580_v5 = vcombine.low %v324_v1, %v324_v1  ;;  %v1819_v6 = vld [vmem:[#allocation2 + $0x104] ss:$8 sps:$4 sm:$0xff]   ;;  %v1579_v45 = vcombine.high %v323_v43, %v323_v43  ;;  %s300_s18 = sand.u32 1, %s2081_s25  }
  0x52   : > { %v1817_v9 = vld [vmem:[#allocation2 + $0x100] ss:$8 sps:$4 sm:$0xff]   ;;  %v1822_v10 = vld [vmem:[#allocation2 + $0x114] ss:$8 sps:$4 sm:$0xff]   ;;  %v1820_v13 = vld [vmem:[#allocation2 + $0x110] ss:$8 sps:$4 sm:$0xff]   ;;  %v1578_v46 = vcombine.low %v323_v43, %v323_v43 }
  0x53   : > { %s2470_s16 = smov (!%p304_p12, %s1575_s16), 7  ;;  %1585 = vmatprep.subr.msk.bf16.mxu1 %vm363_vm0, %v1581_v4  ;;  %v371_v7 = vsel %vm363_vm0, %v1580_v5, 0  ;;  %v1825_v14 = vld [vmem:[#allocation2 + $0x124] ss:$8 sps:$4 sm:$0xff]   ;;  %v1823_v16 = vld [vmem:[#allocation2 + $0x120] ss:$8 sps:$4 sm:$0xff]   ;;  %1582 = vmatprep.subr.msk.bf16.mxu0 %vm363_vm0, %v1579_v45 }
  0x54   : > { %s1576_s13 = sshll.u32 %s2470_s16, 3  ;;  %430 = vmatpush1.bf16.msra.mxu1 %v371_v7  ;;  %v1828_v17 = vld [vmem:[#allocation2 + $0x134] ss:$8 sps:$4 sm:$0xff]   ;;  %v1826_v18 = vld [vmem:[#allocation2 + $0x130] ss:$8 sps:$4 sm:$0xff]   ;;  %v1867_v44 = vld [vmem:[#allocation5 + $0xc0] sm:$0xff]  }
  0x55   : > { %s307_s21 = scalar_lea.vmem %s2439_s0, %s1576_s13  ;;  %978 = vmatprep.subr.bf16.mxu1 %v1819_v6  ;;  %v1831_v19 = vld [vmem:[#allocation2 + $0x144] ss:$8 sps:$4 sm:$0xff]   ;;  %v1829_v20 = vld [vmem:[#allocation2 + $0x140] ss:$8 sps:$4 sm:$0xff]   ;;  %v1834_v21 = vld [vmem:[#allocation2 + $0x154] ss:$8 sps:$4 sm:$0xff]  }
  0x56   : > { %v311_v2 = vld [vmem:[%s307_s21] sm:$0xff]  ;;  %v312_v3 = vld [vmem:[%s307_s21 + $0x8] sm:$0xff]  ;;  %v313_v11 = vld [vmem:[%s307_s21 + $0x10] sm:$0xff]  ;;  %v365_v47 = vsel %vm363_vm0, %v1578_v46, 0  ;;  %v2292_v49 = vshrl.u32 %v326_v48, 7  ;;  %s1574_s20 = sshll.u32 %s300_s18, 5 }
  0x57   : > { %v2272_v8 = vpack.c.bf16 %v312_v3, %v311_v2  ;;  %v314_v12 = vld [vmem:[%s307_s21 + $0x18] sm:$0xff]  ;;  %v1837_v23 = vld [vmem:[#allocation2 + $0x164] ss:$8 sps:$4 sm:$0xff]   ;;  %v1835_v24 = vld [vmem:[#allocation2 + $0x160] ss:$8 sps:$4 sm:$0xff]   ;;  %377 = vmatpush1.bf16.msra.mxu0 %v365_v47  ;;  %s302_s23 = scalar_lea.vmem [#allocation7], %s1574_s20 }
  0x58   : > { %v2277_v15 = vpack.c.bf16 %v314_v12, %v313_v11  ;;  %v1832_v22 = vld [vmem:[#allocation2 + $0x150] ss:$8 sps:$4 sm:$0xff]   ;;  %v1840_v25 = vld [vmem:[#allocation2 + $0x174] ss:$8 sps:$4 sm:$0xff]   ;;  %v1843_v27 = vld [vmem:[#allocation2 + $0x184] ss:$8 sps:$4 sm:$0xff]  }
  0x59   : > { %1586 = vmatmul.mubr.msk.bf16.vlgmr.msra.gmra.mrb[0].mxu1 %vm356_vm1, %v2272_v8  ;;  %v1838_v26 = vld [vmem:[#allocation2 + $0x170] ss:$8 sps:$4 sm:$0xff]   ;;  %v1841_v28 = vld [vmem:[#allocation2 + $0x180] ss:$8 sps:$4 sm:$0xff]   ;;  %v1846_v29 = vld [vmem:[#allocation2 + $0x194] ss:$8 sps:$4 sm:$0xff]  }
  0x5a   : > { %471 = vmatprep.mubr.bf16.mxu1 %v2097_v0  ;;  %979 = vmatpush1.bf16.msra.mxu1 %v1817_v9  ;;  %v1844_v30 = vld [vmem:[#allocation2 + $0x190] ss:$8 sps:$4 sm:$0xff]   ;;  %v1849_v31 = vld [vmem:[#allocation2 + $0x1a4] ss:$8 sps:$4 sm:$0xff]   ;;  %v1847_v32 = vld [vmem:[#allocation2 + $0x1a0] ss:$8 sps:$4 sm:$0xff]  }
  0x5b   : > { %980 = vmatprep.subr.bf16.mxu1 %v1822_v10  ;;  %v1852_v33 = vld [vmem:[#allocation2 + $0x1b4] ss:$8 sps:$4 sm:$0xff]   ;;  %v1850_v34 = vld [vmem:[#allocation2 + $0x1b0] ss:$8 sps:$4 sm:$0xff]   ;;  %v1855_v35 = vld [vmem:[#allocation2 + $0x1c4] ss:$8 sps:$4 sm:$0xff]   ;;  %1583 = vmatmul.mubr.msk.bf16.vlgmr.msra.gmra.mrb[0].mxu0 %vm356_vm1, %v2272_v8 }
  0x5c   : > { %v1853_v36 = vld [vmem:[#allocation2 + $0x1c0] ss:$8 sps:$4 sm:$0xff]   ;;  %v1858_v37 = vld [vmem:[#allocation2 + $0x1d4] ss:$8 sps:$4 sm:$0xff]   ;;  %v1856_v38 = vld [vmem:[#allocation2 + $0x1d0] ss:$8 sps:$4 sm:$0xff]   ;;  %418 = vmatprep.mubr.bf16.mxu0 %v2097_v0 }
  0x5d   : > { %v1861_v39 = vld [vmem:[#allocation2 + $0x1e4] ss:$8 sps:$4 sm:$0xff]   ;;  %v1859_v40 = vld [vmem:[#allocation2 + $0x1e0] ss:$8 sps:$4 sm:$0xff]   ;;  %v1864_v41 = vld [vmem:[#allocation2 + $0x1f4] ss:$8 sps:$4 sm:$0xff]  }
  0x5e   : > { %981 = vmatpush1.bf16.msra.mxu1 %v1820_v13  ;;  %v1862_v42 = vld [vmem:[#allocation2 + $0x1f0] ss:$8 sps:$4 sm:$0xff]   ;;  %v336_v50 = vsub.s32 2, %v2292_v49  ;;  %v2298_v51 = vld [vmem:[%s2441_s2] sm:$0xf]  ;;  %v340_v52 = vsub.s32 3, %v2292_v49 }
  0x5f   : > { %982 = vmatprep.subr.bf16.mxu1 %v1825_v14  ;;  %v1868_v6 = vld [vmem:[#allocation5 + $0x80] sm:$0xff]   ;;  %v1869_v9 = vld [vmem:[#allocation5 + $0xc8] sm:$0xff]   ;;  %s1482_s29 = sshll.u32 %s302_s23, 4  ;;  %s1691_s8 = sshll.u32 %s2162_s28, 9  ;;  %s2384_s29 = int_to_ptr.vmem [resolvable:$true] %s1482_s29 }
  0x60   : > { %v337_v53 = vrot.slane %v2298_v51, %v336_v50  ;;  %v341_v54 = vrot.slane %v2298_v51, %v340_v52  ;;  %v1892_v50 = vld [vmem:[#allocation2 + $0x30] ss:$8 sps:$4 sm:$0xff]   ;;  %s2389_s10 = scalar_lea.hbm %s2446_s7, %s1691_s8  ;;  %s2398_s28 = scalar_lea.sflag [#allocation4], %s300_s18 }
  0x61   : > { %1587 = vmatmul.mubr.msk.bf16.gmra.mrb[4].mxu1 %vm356_vm1, %v2277_v15  ;;  %s2019_s14 = scalar_lea.vmem %s2384_s29, 512  ;;  %p2462_p1 = scmp.ne.s32.totalorder %s2451_s11, 0 }
  0x62   : > { %983 = vmatpush1.bf16.msra.mxu1 %v1823_v16  ;;  %p2020_p10 = scmp.ne.s32.totalorder %s2384_s29, %s2019_s14  ;;  %s2098_s17 = smov [#allocation7]  }
  0x63   : > { %984 = vmatprep.subr.bf16.mxu1 %v1828_v17  ;;  %1584 = vmatmul.mubr.msk.bf16.gmra.mrb[4].mxu0 %vm356_vm1, %v2277_v15  ;;  %v1870_v15 = vld [vmem:[#allocation5 + $0x88] sm:$0xff]   ;;  %s2023_s19 = sshll.u32 %s2098_s17, 4  ;;  %s2024_s19 = int_to_ptr.vmem [resolvable:$false] %s2023_s19 }
  0x64   : > { %p2021_p2 = pnand %p2020_p10, %p2462_p1  ;;  %s2025_s16 = scalar_lea.vmem %s2024_s19, 1024 }
  0x65   : > { %p2026_p4 = scmp.lt.s32.totalorder %s2384_s29, %s2024_s19  ;;  %p2027_p7 = scmp.lt.s32.totalorder %s2025_s16, %s2019_s14 }
  0x66   : > { %985 = vmatpush1.bf16.msra.mxu1 %v1826_v18  ;;  %v1871_v18 = vld [vmem:[#allocation5 + $0xd0] sm:$0xff]   ;;  %p2022_p3 = pneg %p2021_p2 }
  0x67   : > { %986 = vmatprep.subr.bf16.mxu1 %v1831_v19  ;;  %p2028_p8 = por %p2027_p7, %p2026_p4 }
  0x69   : > { %p2029_p11 = pnand %p2028_p8, %p2022_p3 }
  0x6a   : > { %987 = vmatpush1.bf16.msra.mxu1 %v1829_v20 }
  0x6b   : > { %988 = vmatprep.subr.bf16.mxu1 %v1834_v21 }
  0x6e   : > { %989 = vmatpush1.bf16.msra.mxu1 %v1832_v22 }
  0x6f   : > { %990 = vmatprep.subr.bf16.mxu1 %v1837_v23  ;;  %v1872_v23 = vld [vmem:[#allocation5 + $0x90] sm:$0xff]  }
  0x72   : > { %991 = vmatpush1.bf16.msra.mxu1 %v1835_v24  ;;  %v1873_v24 = vld [vmem:[#allocation5 + $0xd8] sm:$0xff]  }
  0x73   : > { %992 = vmatprep.subr.bf16.mxu1 %v1840_v25  ;;  %v1874_v25 = vld [vmem:[#allocation5 + $0x98] sm:$0xff]  }
  0x76   : > { %993 = vmatpush1.bf16.msra.mxu1 %v1838_v26  ;;  %v1875_v26 = vld [vmem:[#allocation5 + $0xe0] sm:$0xff]  }
  0x77   : > { %994 = vmatprep.subr.bf16.mxu1 %v1843_v27  ;;  %v1876_v27 = vld [vmem:[#allocation5 + $0xa0] sm:$0xff]  }
  0x7a   : > { %995 = vmatpush1.bf16.msra.mxu1 %v1841_v28  ;;  %v1877_v28 = vld [vmem:[#allocation5 + $0xe8] sm:$0xff]  }
  0x7b   : > { %996 = vmatprep.subr.bf16.mxu1 %v1846_v29  ;;  %v1878_v29 = vld [vmem:[#allocation5 + $0xa8] sm:$0xff]  }
  0x7e   : > { %997 = vmatpush1.bf16.msra.mxu1 %v1844_v30  ;;  %v1879_v30 = vld [vmem:[#allocation5 + $0xf0] sm:$0xff]  }
  0x7f   : > { %998 = vmatprep.subr.bf16.mxu1 %v1849_v31  ;;  %v1880_v31 = vld [vmem:[#allocation5 + $0xb0] sm:$0xff]  }
  0x82   : > { %999 = vmatpush1.bf16.msra.mxu1 %v1847_v32  ;;  %v1881_v32 = vld [vmem:[#allocation5 + $0xf8] sm:$0xff]  }
  0x83   : > { %1000 = vmatprep.subr.bf16.mxu1 %v1852_v33  ;;  %v1882_v33 = vld [vmem:[#allocation5 + $0xb8] sm:$0xff]  }
  0x86   : > { %1001 = vmatpush1.bf16.msra.mxu1 %v1850_v34  ;;  %v1883_v34 = vld [vmem:[#allocation2] ss:$8 sps:$4 sm:$0xff]  }
  0x87   : > { %1002 = vmatprep.subr.bf16.mxu1 %v1855_v35  ;;  %v1885_v35 = vld [vmem:[#allocation2 + $0x4] ss:$8 sps:$4 sm:$0xff]  }
  0x88   : > { %709 = vmatprep.subr.bf16.mxu0 %v1885_v35  ;;  %v1577_v35 = vld [vmem:[%s2443_s4 + $0x1] ss:$2 sm:$0x3] }
  0x89   : > { %710 = vmatpush1.bf16.msra.mxu0 %v1883_v34  ;;  %v1928_v34 = vld [vmem:[#allocation2 + $0xf0] ss:$8 sps:$4 sm:$0xff]  }
  0x8a   : > { %1003 = vmatpush1.bf16.msra.mxu1 %v1853_v36  ;;  %v1888_v36 = vld [vmem:[#allocation2 + $0x14] ss:$8 sps:$4 sm:$0xff]  }
  0x8b   : > { %1004 = vmatprep.subr.bf16.mxu1 %v1858_v37  ;;  %v1886_v37 = vld [vmem:[#allocation2 + $0x10] ss:$8 sps:$4 sm:$0xff]   ;;  %711 = vmatprep.subr.bf16.mxu0 %v1888_v36 }
  0x8d   : > { %712 = vmatpush1.bf16.msra.mxu0 %v1886_v37 }
  0x8e   : > { %1005 = vmatpush1.bf16.msra.mxu1 %v1856_v38  ;;  %v2304_v38 = vsub.s32 0, %v2292_v49 }
  0x8f   : > { %1006 = vmatprep.subr.bf16.mxu1 %v1861_v39  ;;  %v1891_v39 = vld [vmem:[#allocation2 + $0x24] ss:$8 sps:$4 sm:$0xff]  }
  0x90   : > { %713 = vmatprep.subr.bf16.mxu0 %v1891_v39  ;;  %v811_v36 = vrot.slane %v1577_v35, %v2304_v38 }
  0x92   : > { %1007 = vmatpush1.bf16.msra.mxu1 %v1859_v40  ;;  %v2307_v40 = vsub.s32 1, %v2292_v49  ;;  %v1897_v49 = vld [vmem:[#allocation2 + $0x44] ss:$8 sps:$4 sm:$0xff]  }
  0x93   : > { %1008 = vmatprep.subr.bf16.mxu1 %v1864_v41  ;;  %v329_v41 = vrot.slane %v2298_v51, %v2304_v38 }
  0x94   : > { %v333_v43 = vrot.slane %v2298_v51, %v2307_v40  ;;  %v815_v37 = vrot.slane %v1577_v35, %v2307_v40 }
  0x96   : > { %1009 = vmatpush1.bf16.msra.mxu1 %v1862_v42  ;;  %v1889_v42 = vld [vmem:[#allocation2 + $0x20] ss:$8 sps:$4 sm:$0xff]  }
  0x97   : > { %1720 = vmatprep.subr.bf16.mxu1 %v1867_v44  ;;  %v1894_v44 = vld [vmem:[#allocation2 + $0x34] ss:$8 sps:$4 sm:$0xff]   ;;  %714 = vmatpush1.bf16.msra.mxu0 %v1889_v42 }
  0x98   : > { %715 = vmatprep.subr.bf16.mxu0 %v1894_v44 }
  0x9b   : > { %716 = vmatpush1.bf16.msra.mxu0 %v1892_v50 }
  0x9c   : > { %717 = vmatprep.subr.bf16.mxu0 %v1897_v49 }
 0x12c   : > { %v463_v55 = vpop.f32.mrb[0].mxu1 }
 0x12d   : > { %v464_v56 = vadd.f32 %v463_v55, %v337_v53  ;;  %v465_v57 = vpop.f32.mrb[1].mxu1 }
 0x12e   : > { %v466_v58 = vadd.f32 %v465_v57, %v341_v54  ;;  %v467_v59 = vpop.f32.mrb[2].mxu1  ;;  %v410_v45 = vpop.f32.mrb[0].mxu0 }
 0x12f   : > { %v468_v60 = vadd.f32 %v467_v59, %v337_v53  ;;  %v469_v61 = vpop.f32.mrb[3].mxu1  ;;  %v484_v63 = vmax.f32 %v464_v56, 0.0  ;;  %v411_v46 = vadd.f32 %v410_v45, %v329_v41  ;;  %v412_v47 = vpop.f32.mrb[1].mxu0 }
 0x130   : > { %v470_v62 = vadd.f32 %v469_v61, %v341_v54  ;;  %v485_v1 = vmax.f32 %v466_v58, 0.0  ;;  %v413_v52 = vadd.f32 %v412_v47, %v333_v43 }
 0x131   : > { %v488_v0 = vmax.f32 %v468_v60, 0.0 }
 0x132   : > { %v489_v2 = vmax.f32 %v470_v62, 0.0  ;;  %v483_v57 = vmax.f32 %v413_v52, 0.0  ;;  %v1895_v62 = vld [vmem:[#allocation2 + $0x40] ss:$8 sps:$4 sm:$0xff]  }
 0x133   : > { %v502_v3 = vpack.c.bf16 %v488_v0, %v484_v63  ;;  %718 = vmatpush1.bf16.msra.mxu0 %v1895_v62 }
 0x134   : > { %v503_v4 = vpack.c.bf16 %v489_v2, %v485_v1  ;;  %v473_v5 = vpop.f32.mrb[4].mxu1  ;;  %v1900_v2 = vld [vmem:[#allocation2 + $0x54] ss:$8 sps:$4 sm:$0xff]  }
 0x135   : > { %v474_v7 = vadd.f32 %v473_v5, %v337_v53  ;;  %v475_v8 = vpop.f32.mrb[5].mxu1  ;;  %719 = vmatprep.subr.bf16.mxu0 %v1900_v2 }
 0x136   : > { %v476_v10 = vadd.f32 %v475_v8, %v341_v54  ;;  %v477_v11 = vpop.f32.mrb[6].mxu1  ;;  %1010 = vmatprep.mubr.bf16.mxu1 %v503_v4 }
 0x137   : > { %v478_v12 = vadd.f32 %v477_v11, %v337_v53  ;;  %v479_v13 = vpop.f32.mrb[7].mxu1  ;;  %1011 = vmatmul.mubr.bf16.vlgmr.msra.gmra.mrb[8].mxu1 %v502_v3  ;;  %v492_v16 = vmax.f32 %v474_v7, 0.0  ;;  %v414_v53 = vpop.f32.mrb[2].mxu0  ;;  %v1898_v11 = vld [vmem:[#allocation2 + $0x50] ss:$8 sps:$4 sm:$0xff]  }
 0x138   : > { %v480_v14 = vadd.f32 %v479_v13, %v341_v54  ;;  %1721 = vmatpush3.bf16.msra.mxu1 %v1868_v6  ;;  %v493_v19 = vmax.f32 %v476_v10, 0.0  ;;  %v482_v54 = vmax.f32 %v411_v46, 0.0  ;;  %v415_v55 = vadd.f32 %v414_v53, %v329_v41  ;;  %v416_v56 = vpop.f32.mrb[3].mxu0  ;;  %v1903_v13 = vld [vmem:[#allocation2 + $0x64] ss:$8 sps:$4 sm:$0xff]   ;;  %720 = vmatpush1.bf16.msra.mxu0 %v1898_v11  ;;  %v1937_v11 = vld [vmem:[#allocation5 + $0x58] sm:$0xff]  }
 0x139   : > { %v496_v17 = vmax.f32 %v478_v12, 0.0  ;;  %1722 = vmatprep.subr.bf16.mxu1 %v1869_v9  ;;  %v417_v58 = vadd.f32 %v416_v56, %v333_v43  ;;  %v420_v59 = vpop.f32.mrb[4].mxu0  ;;  %721 = vmatprep.subr.bf16.mxu0 %v1903_v13  ;;  %v1939_v13 = vld [vmem:[#allocation5 + $0x60] sm:$0xff]  }
 0x13a   : > { %v497_v20 = vmax.f32 %v480_v14, 0.0  ;;  %v486_v60 = vmax.f32 %v415_v55, 0.0  ;;  %v421_v61 = vadd.f32 %v420_v59, %v329_v41  ;;  %v422_v51 = vpop.f32.mrb[5].mxu0 }
 0x13b   : > { %v504_v21 = vpack.c.bf16 %v496_v17, %v492_v16  ;;  %v487_v63 = vmax.f32 %v417_v58, 0.0  ;;  %v423_v0 = vadd.f32 %v422_v51, %v333_v43  ;;  %v424_v1 = vpop.f32.mrb[6].mxu0  ;;  %v1901_v16 = vld [vmem:[#allocation2 + $0x60] ss:$8 sps:$4 sm:$0xff]   ;;  %v1906_v17 = vld [vmem:[#allocation2 + $0x74] ss:$8 sps:$4 sm:$0xff]  }
 0x13c   : > { %v505_v22 = vpack.c.bf16 %v497_v20, %v493_v19  ;;  %1723 = vmatpush3.bf16.msra.mxu1 %v1870_v15  ;;  %v498_v3 = vpack.c.bf16 %v486_v60, %v482_v54  ;;  %v490_v4 = vmax.f32 %v421_v61, 0.0  ;;  %v425_v5 = vadd.f32 %v424_v1, %v329_v41  ;;  %v426_v6 = vpop.f32.mrb[7].mxu0  ;;  %722 = vmatpush1.bf16.msra.mxu0 %v1901_v16  ;;  %v1909_v19 = vld [vmem:[#allocation2 + $0x84] ss:$8 sps:$4 sm:$0xff]   ;;  %v1907_v20 = vld [vmem:[#allocation2 + $0x80] ss:$8 sps:$4 sm:$0xff]  }
 0x13d   : > { %1724 = vmatprep.subr.bf16.mxu1 %v1871_v18  ;;  %v499_v7 = vpack.c.bf16 %v487_v63, %v483_v57  ;;  %v491_v8 = vmax.f32 %v423_v0, 0.0  ;;  %v427_v9 = vadd.f32 %v426_v6, %v333_v43  ;;  %v1904_v18 = vld [vmem:[#allocation2 + $0x70] ss:$8 sps:$4 sm:$0xff]   ;;  %723 = vmatprep.subr.bf16.mxu0 %v1906_v17  ;;  %v1932_v6 = vld [vmem:[#allocation5] sm:$0xff]   ;;  %v1942_v16 = vld [vmem:[#allocation5 + $0x28] sm:$0xff]  }
 0x13e   : > { %1020 = vmatprep.mubr.bf16.mxu1 %v505_v22  ;;  %v494_v10 = vmax.f32 %v425_v5, 0.0  ;;  %v1910_v22 = vld [vmem:[#allocation2 + $0x90] ss:$8 sps:$4 sm:$0xff]   ;;  %v1931_v5 = vld [vmem:[#allocation5 + $0x40] sm:$0xff]  }
 0x13f   : > { %1021 = vmatmul.mubr.bf16.gmra.mrb[12].mxu1 %v504_v21  ;;  %741 = vmatprep.mubr.bf16.mxu0 %v499_v7  ;;  %v495_v12 = vmax.f32 %v427_v9, 0.0  ;;  %v1912_v21 = vld [vmem:[#allocation2 + $0x94] ss:$8 sps:$4 sm:$0xff]   ;;  %v1933_v7 = vld [vmem:[#allocation5 + $0x48] sm:$0xff]  }
 0x140   : > { %1725 = vmatpush3.bf16.msra.mxu1 %v1872_v23  ;;  %v500_v14 = vpack.c.bf16 %v494_v10, %v490_v4  ;;  %724 = vmatpush1.bf16.msra.mxu0 %v1904_v18  ;;  %v1915_v23 = vld [vmem:[#allocation2 + $0xa4] ss:$8 sps:$4 sm:$0xff]   ;;  %v1935_v9 = vld [vmem:[#allocation5 + $0x50] sm:$0xff]  }
 0x141   : > { %1726 = vmatprep.subr.bf16.mxu1 %v1873_v24  ;;  %v501_v15 = vpack.c.bf16 %v495_v12, %v491_v8  ;;  %725 = vmatprep.subr.bf16.mxu0 %v1909_v19  ;;  %v1913_v24 = vld [vmem:[#allocation2 + $0xa0] ss:$8 sps:$4 sm:$0xff]   ;;  %v1936_v10 = vld [vmem:[#allocation5 + $0x10] sm:$0xff]   ;;  %v1938_v12 = vld [vmem:[#allocation5 + $0x18] sm:$0xff]  }
 0x142   : > { %v1934_v8 = vld [vmem:[#allocation5 + $0x8] sm:$0xff]   ;;  %v1943_v17 = vld [vmem:[#allocation5 + $0x70] sm:$0xff]   ;;  %v1945_v19 = vld [vmem:[#allocation5 + $0x78] sm:$0xff]  }
 0x143   : > { %v1944_v18 = vld [vmem:[#allocation5 + $0x30] sm:$0xff]  }
 0x144   : > { %1727 = vmatpush3.bf16.msra.mxu1 %v1874_v25  ;;  %726 = vmatpush1.bf16.msra.mxu0 %v1907_v20  ;;  %v1918_v25 = vld [vmem:[#allocation2 + $0xb4] ss:$8 sps:$4 sm:$0xff]  }
 0x145   : > { %1728 = vmatprep.subr.bf16.mxu1 %v1875_v26  ;;  %727 = vmatprep.subr.bf16.mxu0 %v1912_v21  ;;  %v1916_v26 = vld [vmem:[#allocation2 + $0xb0] ss:$8 sps:$4 sm:$0xff]   ;;  %v318_v21 = vld [vmem:[%s2443_s4] ss:$2 sm:$0x3] }
 0x146   : > { %v1946_v20 = vld [vmem:[#allocation5 + $0x38] sm:$0xff]  }
 0x148   : > { %1729 = vmatpush3.bf16.msra.mxu1 %v1876_v27  ;;  %728 = vmatpush1.bf16.msra.mxu0 %v1910_v22  ;;  %v1921_v27 = vld [vmem:[#allocation2 + $0xc4] ss:$8 sps:$4 sm:$0xff]   ;;  %v542_v22 = vrot.slane %v318_v21, %v2304_v38 }
 0x149   : > { %1730 = vmatprep.subr.bf16.mxu1 %v1877_v28  ;;  %729 = vmatprep.subr.bf16.mxu0 %v1915_v23  ;;  %v1919_v28 = vld [vmem:[#allocation2 + $0xc0] ss:$8 sps:$4 sm:$0xff]   ;;  %v546_v23 = vrot.slane %v318_v21, %v2307_v40 }
 0x14c   : > { %1731 = vmatpush3.bf16.msra.mxu1 %v1878_v29  ;;  %730 = vmatpush1.bf16.msra.mxu0 %v1913_v24  ;;  %v1924_v29 = vld [vmem:[#allocation2 + $0xd4] ss:$8 sps:$4 sm:$0xff]  }
 0x14d   : > { %1732 = vmatprep.subr.bf16.mxu1 %v1879_v30  ;;  %731 = vmatprep.subr.bf16.mxu0 %v1918_v25  ;;  %v1922_v30 = vld [vmem:[#allocation2 + $0xd0] ss:$8 sps:$4 sm:$0xff]  }
 0x150   : > { %1733 = vmatpush3.bf16.msra.mxu1 %v1880_v31  ;;  %732 = vmatpush1.bf16.msra.mxu0 %v1916_v26  ;;  %v1927_v31 = vld [vmem:[#allocation2 + $0xe4] ss:$8 sps:$4 sm:$0xff]  }
 0x151   : > { %1734 = vmatprep.subr.bf16.mxu1 %v1881_v32  ;;  %733 = vmatprep.subr.bf16.mxu0 %v1921_v27  ;;  %v1925_v32 = vld [vmem:[#allocation2 + $0xe0] ss:$8 sps:$4 sm:$0xff]  }
 0x154   : > { %1735 = vmatpush3.bf16.msra.mxu1 %v1882_v33  ;;  %734 = vmatpush1.bf16.msra.mxu0 %v1919_v28  ;;  %v1930_v33 = vld [vmem:[#allocation2 + $0xf4] ss:$8 sps:$4 sm:$0xff]  }
 0x155   : > { %735 = vmatprep.subr.bf16.mxu0 %v1924_v29 }
 0x158   : > { %736 = vmatpush1.bf16.msra.mxu0 %v1922_v30 }
 0x159   : > { %737 = vmatprep.subr.bf16.mxu0 %v1927_v31 }
 0x15c   : > { %738 = vmatpush1.bf16.msra.mxu0 %v1925_v32 }
 0x15d   : > { %739 = vmatprep.subr.bf16.mxu0 %v1930_v33 }
 0x160   : > { %740 = vmatpush1.bf16.msra.mxu0 %v1928_v34 }
 0x161   : > { %1692 = vmatprep.subr.bf16.mxu0 %v1931_v5 }
 0x163   : > { %742 = vmatmul.mubr.bf16.vlgmr.msra.gmra.mrb[8].mxu0 %v498_v3 }
 0x164   : > { %751 = vmatprep.mubr.bf16.mxu0 %v501_v15  ;;  %1693 = vmatpush3.bf16.msra.mxu0 %v1932_v6  ;;  %v1941_v15 = vld [vmem:[#allocation5 + $0x68] sm:$0xff]  }
 0x165   : > { %1694 = vmatprep.subr.bf16.mxu0 %v1933_v7 }
 0x168   : > { %1695 = vmatpush3.bf16.msra.mxu0 %v1934_v8 }
 0x169   : > { %1696 = vmatprep.subr.bf16.mxu0 %v1935_v9 }
 0x16b   : > { %752 = vmatmul.mubr.bf16.gmra.mrb[12].mxu0 %v500_v14  ;;  %v1940_v14 = vld [vmem:[#allocation5 + $0x20] sm:$0xff]  }
 0x16c   : > { %1697 = vmatpush3.bf16.msra.mxu0 %v1936_v10 }
 0x16d   : > { %1698 = vmatprep.subr.bf16.mxu0 %v1937_v11 }
 0x170   : > { %1699 = vmatpush3.bf16.msra.mxu0 %v1938_v12 }
 0x171   : > { %1700 = vmatprep.subr.bf16.mxu0 %v1939_v13 }
 0x174   : > { %1701 = vmatpush3.bf16.msra.mxu0 %v1940_v14 }
 0x175   : > { %1702 = vmatprep.subr.bf16.mxu0 %v1941_v15 }
 0x178   : > { %1703 = vmatpush3.bf16.msra.mxu0 %v1942_v16 }
 0x179   : > { %1704 = vmatprep.subr.bf16.mxu0 %v1943_v17 }
 0x17c   : > { %1705 = vmatpush3.bf16.msra.mxu0 %v1944_v18 }
 0x17d   : > { %1706 = vmatprep.subr.bf16.mxu0 %v1945_v19 }
 0x180   : > { %1707 = vmatpush3.bf16.msra.mxu0 %v1946_v20 }
 0x20a   : > { %v1012_v39 = vpop.f32.mrb[8].mxu1 }
 0x20b   : > { %v1013_v41 = vadd.f32 %v1012_v39, %v811_v36  ;;  %v1014_v42 = vpop.f32.mrb[9].mxu1 }
 0x20c   : > { %v1015_v43 = vadd.f32 %v1014_v42, %v815_v37  ;;  %v1016_v44 = vpop.f32.mrb[10].mxu1 }
 0x20d   : > { %v1017_v45 = vadd.f32 %v1016_v44, %v811_v36  ;;  %v1018_v46 = vpop.f32.mrb[11].mxu1  ;;  %v1031_v50 = vmax.f32 %v1013_v41, 0.0 }
 0x20e   : > { %v1019_v47 = vadd.f32 %v1018_v46, %v815_v37  ;;  %v1032_v53 = vmax.f32 %v1015_v43, 0.0 }
 0x20f   : > { %v1033_v52 = vmax.f32 %v1017_v45, 0.0 }
 0x210   : > { %v1034_v49 = vmax.f32 %v1019_v47, 0.0 }
 0x211   : > { %v1039_v54 = vpack.c.bf16 %v1033_v52, %v1031_v50 }
 0x212   : > { %v1040_v55 = vpack.c.bf16 %v1034_v49, %v1032_v53  ;;  %v1022_v56 = vpop.f32.mrb[12].mxu1 }
 0x213   : > { %v1023_v57 = vadd.f32 %v1022_v56, %v811_v36  ;;  %v1024_v58 = vpop.f32.mrb[13].mxu1 }
 0x214   : > { %v1025_v59 = vadd.f32 %v1024_v58, %v815_v37  ;;  %v1026_v60 = vpop.f32.mrb[14].mxu1  ;;  %1389 = vmatprep.mubr.bf16.mxu1 %v1040_v55 }
 0x215   : > { %v1027_v61 = vadd.f32 %v1026_v60, %v811_v36  ;;  %v1028_v51 = vpop.f32.mrb[15].mxu1  ;;  %1390 = vmatmul.mubr.bf16.vlgmr.msra.gmra.mrb[16].mxu1 %v1039_v54  ;;  %v1035_v63 = vmax.f32 %v1023_v57, 0.0  ;;  %v2324_v54 = vand.u32 127, %v326_v48  ;;  %v1669_v57 = vld [vmem:[%s2445_s6 + $0x1] ss:$0 sm:$0xff] }
 0x216   : > { %v1029_v62 = vadd.f32 %v1028_v51, %v815_v37  ;;  %v1036_v1 = vmax.f32 %v1025_v59, 0.0 }
 0x217   : > { %v1037_v0 = vmax.f32 %v1027_v61, 0.0  ;;  %vm1408_vm2 = vcmp.ge.s32.totalorder %v2324_v54, 6  ;;  %vm1409_vm3 = vcmp.lt.s32.totalorder %v2324_v54, 12  ;;  %vm1455_vm5 = vcmp.lt.s32.totalorder %v2324_v54, 6 }
 0x218   : > { %v1038_v2 = vmax.f32 %v1029_v62, 0.0  ;;  %vm2333_vm4 = vmand %vm1408_vm2, %vm1409_vm3 }
 0x219   : > { %v1041_v3 = vpack.c.bf16 %v1037_v0, %v1035_v63 }
 0x21a   : > { %v1042_v4 = vpack.c.bf16 %v1038_v2, %v1036_v1 }
 0x21c   : > { %1397 = vmatprep.mubr.bf16.mxu1 %v1042_v4 }
 0x21d   : > { %1398 = vmatmul.mubr.bf16.gmra.mrb[20].mxu1 %v1041_v3 }
 0x236   : > { %v743_v24 = vpop.f32.mrb[8].mxu0 }
 0x237   : > { %v744_v25 = vadd.f32 %v743_v24, %v542_v22  ;;  %v745_v26 = vpop.f32.mrb[9].mxu0 }
 0x238   : > { %v746_v27 = vadd.f32 %v745_v26, %v546_v23  ;;  %v747_v28 = vpop.f32.mrb[10].mxu0 }
 0x239   : > { %v762_v29 = vmax.f32 %v744_v25, 0.0  ;;  %v748_v30 = vadd.f32 %v747_v28, %v542_v22  ;;  %v749_v31 = vpop.f32.mrb[11].mxu0 }
 0x23a   : > { %v763_v32 = vmax.f32 %v746_v27, 0.0  ;;  %v750_v33 = vadd.f32 %v749_v31, %v546_v23 }
 0x23b   : > { %v764_v34 = vmax.f32 %v748_v30, 0.0 }
 0x23c   : > { %v765_v35 = vmax.f32 %v750_v33, 0.0 }
 0x23d   : > { %v770_v36 = vpack.c.bf16 %v764_v34, %v762_v29 }
 0x23e   : > { %v771_v37 = vpack.c.bf16 %v765_v35, %v763_v32  ;;  %v753_v39 = vpop.f32.mrb[12].mxu0 }
 0x23f   : > { %v754_v41 = vadd.f32 %v753_v39, %v542_v22  ;;  %v755_v42 = vpop.f32.mrb[13].mxu0 }
 0x240   : > { %v756_v38 = vadd.f32 %v755_v42, %v546_v23  ;;  %v757_v43 = vpop.f32.mrb[14].mxu0  ;;  %1207 = vmatprep.mubr.bf16.mxu0 %v771_v37 }
 0x241   : > { %v766_v40 = vmax.f32 %v754_v41, 0.0  ;;  %v758_v44 = vadd.f32 %v757_v43, %v542_v22  ;;  %v759_v45 = vpop.f32.mrb[15].mxu0  ;;  %1208 = vmatmul.mubr.bf16.vlgmr.msra.gmra.mrb[16].mxu0 %v770_v36 }
 0x242   : > { %v767_v46 = vmax.f32 %v756_v38, 0.0  ;;  %v760_v47 = vadd.f32 %v759_v45, %v546_v23 }
 0x243   : > { %v768_v50 = vmax.f32 %v758_v44, 0.0  ;;  %v1652_v44 = vld [vmem:[%s2445_s6] ss:$0 sm:$0xff] }
 0x244   : > { %v769_v52 = vmax.f32 %v760_v47, 0.0 }
 0x245   : > { %v772_v53 = vpack.c.bf16 %v768_v50, %v766_v40 }
 0x246   : > { %v773_v49 = vpack.c.bf16 %v769_v52, %v767_v46 }
 0x248   : > { %1215 = vmatprep.mubr.bf16.mxu0 %v773_v49 }
 0x249   : > { %1216 = vmatmul.mubr.bf16.gmra.mrb[20].mxu0 %v772_v53 }
 0x2e8   : > { %v1736_v55 = vpop.f32.mrb[16].mxu1 }
 0x2e9   : > { %v1737_v56 = vpop.f32.mrb[17].mxu1 }
 0x2ea   : > { %v1738_v58 = vadd.f32 %v1737_v56, %v1736_v55  ;;  %v1739_v59 = vpop.f32.mrb[18].mxu1 }
 0x2eb   : > { %v1740_v60 = vpop.f32.mrb[19].mxu1 }
 0x2ec   : > { %v1741_v48 = vadd.f32 %v1740_v60, %v1739_v59  ;;  %v2337_v51 = vadd.f32 %v1738_v58, %v1669_v57 }
 0x2ee   : > { %v1411_v62 = vsel %vm2333_vm4, %v2337_v51, -1e+30  ;;  %v2342_v63 = vadd.f32 %v1741_v48, %v1669_v57 }
 0x2ef   : > { %1415 = vmax.xlane.f32.xlu0 %v1411_v62 }
 0x2f0   : > { %v1742_v0 = vpop.f32.mrb[20].mxu1  ;;  %v1412_v4 = vsel %vm2333_vm4, %v2342_v63, -1e+30 }
 0x2f1   : > { %v1743_v1 = vpop.f32.mrb[21].mxu1 }
 0x2f2   : > { %v1744_v2 = vadd.f32 %v1743_v1, %v1742_v0  ;;  %v1745_v3 = vpop.f32.mrb[22].mxu1 }
 0x2f3   : > { %v1746_v5 = vpop.f32.mrb[23].mxu1  ;;  %1417 = vmax.xlane.f32.xlu0 %v1412_v4 }
 0x2f4   : > { %v1747_v6 = vadd.f32 %v1746_v5, %v1745_v3  ;;  %v2347_v7 = vadd.f32 %v1744_v2, %v1669_v57 }
 0x2f6   : > { %v1413_v8 = vsel %vm2333_vm4, %v2347_v7, -1e+30  ;;  %v2352_v9 = vadd.f32 %v1747_v6, %v1669_v57 }
 0x2f7   : > { %1419 = vmax.xlane.f32.xlu1 %v1413_v8 }
 0x2f8   : > { %v1414_v10 = vsel %vm2333_vm4, %v2352_v9, -1e+30 }
 0x2fb   : > { %1421 = vmax.xlane.f32.xlu1 %v1414_v10 }
 0x314   : > { %v1708_v27 = vpop.f32.mrb[16].mxu0 }
 0x315   : > { %v1709_v28 = vpop.f32.mrb[17].mxu0 }
 0x316   : > { %v1711_v29 = vpop.f32.mrb[18].mxu0  ;;  %v1710_v31 = vadd.f32 %v1709_v28, %v1708_v27 }
 0x317   : > { %v1712_v30 = vpop.f32.mrb[19].mxu0 }
 0x318   : > { %v1713_v32 = vadd.f32 %v1712_v30, %v1711_v29  ;;  %v1210_v50 = vadd.f32 %v1710_v31, %v1652_v44 }
 0x31a   : > { %v1213_v57 = vadd.f32 %v1713_v32, %v1652_v44 }
 0x31c   : > { %v1714_v33 = vpop.f32.mrb[20].mxu0 }
 0x31d   : > { %v1715_v34 = vpop.f32.mrb[21].mxu0 }
 0x31e   : > { %v1717_v35 = vpop.f32.mrb[22].mxu0  ;;  %v1716_v37 = vadd.f32 %v1715_v34, %v1714_v33 }
 0x31f   : > { %v1718_v36 = vpop.f32.mrb[23].mxu0 }
 0x320   : > { %v1719_v39 = vadd.f32 %v1718_v36, %v1717_v35 }
 0x322   : > { %v1221_v2 = vadd.f32 %v1719_v39, %v1652_v44 }
 0x37c   : > { %v1416_v11 = vpop.xlane.xlu0 %1415 }
 0x37d   : > { %v1423_v12 = vsub.f32 %v1411_v62, %v1416_v11 }
 0x37f   : > { %v1427_v13 = vmul.f32 1.442695, %v1423_v12 }
 0x380   : > { %v1418_v14 = vpop.xlane.xlu0 %1417 }
 0x381   : > { %1947 = vpow2.f32 %v1427_v13  ;;  %v1424_v15 = vsub.f32 %v1412_v4, %v1418_v14 }
 0x383   : > { %v1429_v16 = vmul.f32 1.442695, %v1424_v15 }
 0x384   : > { %v1420_v17 = vpop.xlane.xlu1 %1419 }
 0x385   : > { %1949 = vpow2.f32 %v1429_v16  ;;  %v1425_v18 = vsub.f32 %v1413_v8, %v1420_v17 }
 0x387   : > { %v1431_v19 = vmul.f32 1.442695, %v1425_v18 }
 0x388   : > { %v1422_v20 = vpop.xlane.xlu1 %1421 }
 0x389   : > { %1951 = vpow2.f32 %v1431_v19  ;;  %v2357_v21 = vsub.f32 %v1414_v10, %v1422_v20 }
 0x38b   : > { %v1948_v22 = vpop.eup %1947  ;;  %v1433_v23 = vmul.f32 1.442695, %v2357_v21 }
 0x38c   : > { %1435 = vadd.xlane.f32.xlu0 %v1948_v22 }
 0x38d   : > { %1953 = vpow2.f32 %v1433_v23 }
 0x38f   : > { %v1950_v24 = vpop.eup %1949 }
 0x390   : > { %1437 = vadd.xlane.f32.xlu1 %v1950_v24 }
 0x393   : > { %v1952_v25 = vpop.eup %1951 }
 0x394   : > { %1439 = vadd.xlane.f32.xlu0 %v1952_v25 }
 0x397   : > { %v1954_v26 = vpop.eup %1953 }
 0x398   : > { %1441 = vadd.xlane.f32.xlu1 %v1954_v26 }
 0x419   : > { %v1436_v41 = vpop.xlane.xlu0 %1435 }
 0x41a   : > { %1955 = vlog2.f32 %v1436_v41 }
 0x41d   : > { %v1438_v42 = vpop.xlane.xlu1 %1437 }
 0x41e   : > { %1957 = vlog2.f32 %v1438_v42 }
 0x421   : > { %v1440_v38 = vpop.xlane.xlu0 %1439 }
 0x422   : > { %1959 = vlog2.f32 %v1440_v38 }
 0x424   : > { %v1956_v43 = vpop.eup %1955 }
 0x425   : > { %v1444_v40 = vmul.f32 0.6931472, %v1956_v43  ;;  %v1442_v45 = vpop.xlane.xlu1 %1441 }
 0x426   : > { %1961 = vlog2.f32 %v1442_v45 }
 0x427   : > { %v1451_v46 = vsub.f32 %v1423_v12, %v1444_v40 }
 0x428   : > { %v1958_v47 = vpop.eup %1957 }
 0x429   : > { %v1456_v52 = vsel %vm1409_vm3, %v1451_v46, %v2337_v51  ;;  %v1446_v53 = vmul.f32 0.6931472, %v1958_v47  ;;  %v1218_v51 = vadd.f32 %v1716_v37, %v1652_v44 }
 0x42a   : > { %v1460_v49 = vsel %vm1455_vm5, %v1210_v50, %v1456_v52 }
 0x42b   : > { %1464 = vst [vmem:[%s302_s23] sm:$0xff] %v1460_v49  ;;  %v1452_v55 = vsub.f32 %v1424_v15, %v1446_v53 }
 0x42c   : > { %v1960_v56 = vpop.eup %1959 }
 0x42d   : > { %v1457_v58 = vsel %vm1409_vm3, %v1452_v55, %v2342_v63  ;;  %v1448_v59 = vmul.f32 0.6931472, %v1960_v56 }
 0x42e   : > { %v1461_v60 = vsel %vm1455_vm5, %v1213_v57, %v1457_v58 }
 0x42f   : > { %1465 = vst [vmem:[%s302_s23 + $0x8] sm:$0xff] %v1461_v60  ;;  %v1453_v61 = vsub.f32 %v1425_v18, %v1448_v59 }
 0x430   : > { %v1962_v48 = vpop.eup %1961 }
 0x431   : > { %v1458_v62 = vsel %vm1409_vm3, %v1453_v61, %v2347_v7  ;;  %v1450_v0 = vmul.f32 0.6931472, %v1962_v48 }
 0x432   : > { %v1462_v63 = vsel %vm1455_vm5, %v1218_v51, %v1458_v62 }
 0x433   : > { %1466 = vst [vmem:[%s302_s23 + $0x10] sm:$0xff] %v1462_v63  ;;  %v1454_v1 = vsub.f32 %v2357_v21, %v1450_v0 }
 0x435   : > { %v1459_v3 = vsel %vm1409_vm3, %v1454_v1, %v2352_v9 }
 0x436   : > { %v1463_v4 = vsel %vm1455_vm5, %v1221_v2, %v1459_v3 }
 0x437   : > { %1467 = vst [vmem:[%s302_s23 + $0x18] sm:$0xff] %v1463_v4 }
 0x438   : > { %2032 = shalt.err (!%p2029_p11)
}
 0x439   : > { %s2033_s13 = scalar_lea.hbm %s2389_s10, 512  ;;  %s2037_s21 = scalar_lea.hbm %s2446_s7, 1024 }
 0x43a   : > { %p2034_p13 = scmp.ne.s32.totalorder %s2389_s10, %s2033_s13  ;;  %p2038_p6 = scmp.lt.u32.totalorder %s2389_s10, %s2446_s7 }
 0x43b   : > { %p2039_p9 = scmp.lt.u32.totalorder %s2037_s21, %s2033_s13  ;;  %p2041_p10 = scmp.lt.u32.totalorder %s2033_s13, %s2389_s10 }
 0x43c   : > { %p2035_p0 = pnand %p2034_p13, %p2462_p1 }
 0x43d   : > { %p2040_p12 = por %p2039_p9, %p2038_p6 }
 0x43e   : > { %p2036_p5 = pneg %p2035_p0 }
 0x43f   : > { %p2042_p2 = por %p2041_p10, %p2040_p12 }
 0x441   : > { %p2043_p3 = pnand %p2042_p2, %p2036_p5 }
 0x443   : > { %2046 = shalt.err (!%p2043_p3)
}
 0x444   : > { %s2099_s8 = smov 128   ;;  %s2100_s9 = smov 8  }
 0x445   : > { %1756 = dma.vmem_to_hbm [thread:$0]  (%p2462_p1), %s2384_s29, 512, %s2389_s10, %s2398_s28, %s2099_s8, %s2099_s8, %s2100_s9  }
 0x446 PF: > { %p1773_p4 = scmp.ge.s32.totalorder %s2089_s27, 2  ;;  %s1497_s15 = sand.u32 1, %s2077_s24  }
 0x447   : > { %p2463_p7 = scmp.ne.s32.totalorder %s2452_s12, 0  ;;  %s1498_s14 = scalar_lea.sflag [#allocation4], %s1497_s15 }
 0x449   : > { %p1766_p8 = pnand %p1773_p4, %p2463_p7 }
 0x44b   : > { %2072 = dma.done.wait (!%p1766_p8), %s1498_s14, 512  }
 0x44c   : > { %2074 = vsyncadd (!%p1766_p8), %s1498_s14, 4294966784  ;;  %s2464_s17 = sld [smem:[#allocation11_spill]]  ;;  %p19_p11 = scmp.ge.s32.totalorder %s2166_s30, 4  }
 0x44d   : > { %s2465_s24 = smov %s2081_s25  ;;  %s2466_s25 = smov %s2085_s26 }
 0x44e   : > { %s2468_s27 = smov %s2166_s30  ;;  %21 = sbr.rel (!%p19_p11) target bundleno = 5 (0x5), region = 95 }
 0x452   : > { %s2467_s26 = smov %s2464_s17 }
 0x455   :  { %1503 = vsyncpa [#allocation3], 1 }
 0x456   :  { %1505 = vsyncpa [#allocation3 + $0x1], 1 }
 0x457   :  { %1506 = vsyncpa [#allocation6], 1 }
 0x458   :  { %1507 = vsyncpa [#allocation4], 1 }
 0x459   :  { %1509 = vsyncpa [#allocation4 + $0x1], 1 }

// kernel: tpu_custom_call.1
= control target key start
LH: loop header
LB: loop body
LE: loop exit
PB: predicated region body
PF: predicated region fallthrough
CT: control target
= control target key end

     0   :  { %12 = vsyncpa [#allocation3], 0  ;;  %s2439_s0 = inlined_call_operand.vmem [shape: f32[64,8], index: 0, kind: input, shape index: {}]   ;;  %s2440_s1 = inlined_call_operand.vmem [shape: bf16[8,512], index: 1, kind: input, shape index: {}]   ;;  %s2441_s2 = inlined_call_operand.vmem [shape: f32[1,512], index: 2, kind: input, shape index: {}]   ;;  %s2442_s3 = inlined_call_operand.hbm [shape: bf16[2,256,256], index: 3, kind: input, shape index: {}]   ;;  %s2443_s4 = inlined_call_operand.vmem [shape: f32[2,256], index: 4, kind: input, shape index: {}]   ;;  %s2444_s5 = inlined_call_operand.hbm [shape: bf16[2,256,128], index: 5, kind: input, shape index: {}]   ;;  %s2445_s6 = inlined_call_operand.vmem [shape: f32[2,128], index: 6, kind: input, shape index: {}]   ;;  %s2446_s7 = inlined_call_operand.hbm [shape: f32[64,128], index: 7, kind: output, shape index: {}]  }
   0x1   :  { %13 = vsyncpa [#allocation6], 0 }
   0x2   :  { %14 = vsyncpa [#allocation4], 0 }
   0x3   :  { %16 = vsyncpa [#allocation4 + $0x1], 0  ;;  %s2141_s24 = smov 0   ;;  %s2143_s25 = smov 0  }
   0x4   :  { %s2145_s26 = smov 0   ;;  %s2147_s27 = smov 0  }
   0x5 LB: > { %s2162_s28 = sadd.s32 4294967295, %s2089_s27   ;;  %s1566_s29 = sadd.s32 4294967294, %s2089_s27   ;;  %s2089_s27 = sphi %s2147_s27, %s2468_s27   ;;  %s2085_s26 = sphi %s2145_s26, %s2467_s26   ;;  %s2081_s25 = sphi %s2143_s25, %s2466_s25   ;;  %s2077_s24 = sphi %s2141_s24, %s2465_s24  }
   0x6   : > { %s2166_s30 = sadd.s32 1, %s2089_s27   ;;  %s181_s8 = sadd.s32 1, %s2085_s26 }
   0x7   : > { %s178_s9 = ssub.s32 %s2089_s27, %s2166_s30  ;;  %p191_p0 = scmp.ne.s32.totalorder %s2085_s26, %s2081_s25 }
   0x8   : > { %p179_p1 = scmp.eq.s32.totalorder %s178_s9, 0  ;;  %p192_p2 = scmp.eq.s32.totalorder %s2162_s28, 1 }
   0x9   : > { %p197_p3 = scmp.ne.s32.totalorder %s2081_s25, %s2077_s24  ;;  %p198_p4 = scmp.eq.s32.totalorder %s1566_s29, 1 }
   0xa   : > { %s2177_s10 = scalar_select %p179_p1, %s2085_s26, %s181_s8  }
   0xb   : > { %p2179_p5 = por %p192_p2, %p191_p0  ;;  %p2183_p6 = por %p198_p4, %p197_p3 }
   0xc   : > { %2450 = sst [smem:[#allocation11_spill]] %s2177_s10  ;;  %p1567_p7 = scmp.ge.s32.totalorder %s2089_s27, 1 }
   0xd   : > { %s2451_s11 = scalar_select %p2179_p5, 1, 0 }
   0xe   : > { %s2452_s12 = scalar_select %p2183_p6, 1, 0 }
   0xf   : > { %p205_p8 = scmp.lt.s32.totalorder %s2089_s27, 3  ;;  %p2447_p9 = scmp.eq.s32.totalorder %s2162_s28, 0 }
  0x10   : > { %s2091_s14 = smov [#allocation2]   ;;  %s2092_s17 = smov [#allocation5]  }
  0x11   : > { %p2190_p10 = pnand %p1567_p7, %p205_p8  ;;  %s223_s15 = sshll.u32 %s2091_s14, 4  ;;  %s224_s15 = int_to_ptr.vmem [resolvable:$true] %s223_s15 }
  0x12   : > { %s239_s18 = sshll.u32 %s2092_s17, 4  ;;  %s1963_s21 = scalar_lea.hbm %s2442_s3, 8192  ;;  %s2202_s18 = int_to_ptr.vmem [resolvable:$true] %s239_s18 }
  0x13   : > { %s2453_s13 = scalar_select %p2190_p10, 1, 0 }
  0x14   : > { %p1758_p11 = pneg %p2190_p10  ;;  %p1964_p13 = scmp.ne.s32.totalorder %s2442_s3, %s1963_s21 }
  0x15   : > { %p1970_p3 = scmp.lt.u32.totalorder %s1963_s21, %s2442_s3 }
  0x16   : > { %p2198_p12 = pnand %p2447_p9, %p1758_p11 }
  0x18   : > { %p1965_p0 = pneg %p2198_p12 }
  0x1a   : > { %p1966_p1 = pnand %p1965_p0, %p1964_p13 }
  0x1c   : > { %p1967_p2 = pneg %p1966_p1 }
  0x1e   : > { %p1972_p4 = pnand %p1970_p3, %p1967_p2 }
  0x20   : > { %1975 = shalt.err (!%p1972_p4)
}
  0x21   : > { %s1976_s9 = scalar_lea.vmem %s224_s15, 8192  ;;  %p1984_p9 = scmp.lt.s32.totalorder %s224_s15, %s224_s15 }
  0x22   : > { %p1977_p7 = scmp.ne.s32.totalorder %s224_s15, %s1976_s9  ;;  %p1985_p6 = scmp.lt.s32.totalorder %s1976_s9, %s1976_s9 }
  0x24   : > { %p1979_p8 = pnand %p1977_p7, %p1965_p0  ;;  %p1986_p5 = por %p1985_p6, %p1984_p9 }
  0x26   : > { %p1980_p11 = pneg %p1979_p8 }
  0x28   : > { %p1987_p10 = pnand %p1986_p5, %p1980_p11 }
  0x2a   : > { %1990 = shalt.err (!%p1987_p10)
}
  0x2b   : > { %s2093_s14 = smov 128   ;;  %s2094_s17 = smov 8  }
  0x2c   : > { %1761 = dma.hbm_to_vmem [thread:$0]  (!%p2198_p12), %s2442_s3, 8192, %s224_s15, [#allocation3], %s2093_s14, %s2093_s14, %s2094_s17  }
  0x2d   : > { %s1991_s23 = scalar_lea.hbm %s2444_s5, 4096 }
  0x2e   : > { %p1992_p13 = scmp.ne.s32.totalorder %s2444_s5, %s1991_s23  ;;  %p1998_p9 = scmp.lt.u32.totalorder %s1991_s23, %s2444_s5 }
  0x30   : > { %p1994_p5 = pnand %p1992_p13, %p1965_p0 }
  0x32   : > { %p1995_p6 = pneg %p1994_p5 }
  0x34   : > { %p2000_p10 = pnand %p1998_p9, %p1995_p6 }
  0x36   : > { %2003 = shalt.err (!%p2000_p10)
}
  0x37   : > { %s2004_s15 = scalar_lea.vmem %s2202_s18, 4096  ;;  %p2012_p4 = scmp.lt.s32.totalorder %s2202_s18, %s2202_s18 }
  0x38   : > { %p2005_p1 = scmp.ne.s32.totalorder %s2202_s18, %s2004_s15  ;;  %p2013_p7 = scmp.lt.s32.totalorder %s2004_s15, %s2004_s15 }
  0x3a   : > { %p2007_p2 = pnand %p2005_p1, %p1965_p0  ;;  %p2014_p8 = por %p2013_p7, %p2012_p4 }
  0x3c   : > { %p2008_p3 = pneg %p2007_p2 }
  0x3e   : > { %p2015_p11 = pnand %p2014_p8, %p2008_p3 }
  0x40   : > { %2018 = shalt.err (!%p2015_p11)
}
  0x41   : > { %s2095_s10 = smov 64   ;;  %s2096_s14 = smov 4  }
  0x42   : > { %1764 = dma.hbm_to_vmem [thread:$0]  (!%p2198_p12), %s2444_s5, 4096, %s2202_s18, [#allocation6], %s2095_s10, %s2095_s10, %s2096_s14  }
  0x43   : > { %p2455_p13 = scmp.ne.s32.totalorder %s2453_s13, 0 }
  0x44   : > { %p2456_p0 = scmp.eq.s32.totalorder (!%p2455_p13), %s2162_s28, 0 }
  0x45   : > { %267 = sbr.rel (%p2455_p13) target bundleno = 1094 (0x446), region = 48 }
  0x4c   : > { %2064 = dma.done.wait (%p2456_p0), [#allocation3], 8192   ;;  %p2457_p5 = pmov %p2456_p0 }
  0x4d   : > { %p2458_p6 = pmov %p2456_p0 }
  0x4e   : > { %2066 = vsyncadd (%p2457_p5), [#allocation3], 4294959104 }
  0x4f   : > { %2068 = dma.done.wait (%p2458_p6), [#allocation6], 4096   ;;  %p2459_p9 = pmov %p2456_p0 }
  0x50   : > { %s1575_s16 = sshll.u32 %s2162_s28, 2  ;;  %v2097_v0 = vmov 0   ;;  %v324_v1 = vld [vmem:[%s2440_s1 + $0x8] sm:$0xff]  ;;  %vm363_vm0 = vcmask 1043456   ;;  %vm356_vm1 = vcmask 64512   ;;  %v323_v43 = vld [vmem:[%s2440_s1] sm:$0xff]  ;;  %v326_v48 = vlaneseq }
  0x51   : > { %2070 = vsyncadd (%p2459_p9), [#allocation6], 4294963200  ;;  %461 = vmatprep.mubr.bf16.mxu1 %v2097_v0  ;;  %p304_p12 = scmp.lt.s32.totalorder %s1575_s16, 7  ;;  %408 = vmatprep.mubr.bf16.mxu0 %v2097_v0  ;;  %v1581_v4 = vcombine.high %v324_v1, %v324_v1  ;;  %v1580_v5 = vcombine.low %v324_v1, %v324_v1  ;;  %v1819_v6 = vld [vmem:[#allocation2 + $0x104] ss:$8 sps:$4 sm:$0xff]   ;;  %v1579_v45 = vcombine.high %v323_v43, %v323_v43  ;;  %s300_s18 = sand.u32 1, %s2081_s25  }
  0x52   : > { %v1817_v9 = vld [vmem:[#allocation2 + $0x100] ss:$8 sps:$4 sm:$0xff]   ;;  %v1822_v10 = vld [vmem:[#allocation2 + $0x114] ss:$8 sps:$4 sm:$0xff]   ;;  %v1820_v13 = vld [vmem:[#allocation2 + $0x110] ss:$8 sps:$4 sm:$0xff]   ;;  %v1578_v46 = vcombine.low %v323_v43, %v323_v43 }
  0x53   : > { %s2470_s16 = smov (!%p304_p12, %s1575_s16), 7  ;;  %1585 = vmatprep.subr.msk.bf16.mxu1 %vm363_vm0, %v1581_v4  ;;  %v371_v7 = vsel %vm363_vm0, %v1580_v5, 0  ;;  %v1825_v14 = vld [vmem:[#allocation2 + $0x124] ss:$8 sps:$4 sm:$0xff]   ;;  %v1823_v16 = vld [vmem:[#allocation2 + $0x120] ss:$8 sps:$4 sm:$0xff]   ;;  %1582 = vmatprep.subr.msk.bf16.mxu0 %vm363_vm0, %v1579_v45 }
  0x54   : > { %s1576_s13 = sshll.u32 %s2470_s16, 3  ;;  %430 = vmatpush1.bf16.msra.mxu1 %v371_v7  ;;  %v1828_v17 = vld [vmem:[#allocation2 + $0x134] ss:$8 sps:$4 sm:$0xff]   ;;  %v1826_v18 = vld [vmem:[#allocation2 + $0x130] ss:$8 sps:$4 sm:$0xff]   ;;  %v1867_v44 = vld [vmem:[#allocation5 + $0xc0] sm:$0xff]  }
  0x55   : > { %s307_s21 = scalar_lea.vmem %s2439_s0, %s1576_s13  ;;  %978 = vmatprep.subr.bf16.mxu1 %v1819_v6  ;;  %v1831_v19 = vld [vmem:[#allocation2 + $0x144] ss:$8 sps:$4 sm:$0xff]   ;;  %v1829_v20 = vld [vmem:[#allocation2 + $0x140] ss:$8 sps:$4 sm:$0xff]   ;;  %v1834_v21 = vld [vmem:[#allocation2 + $0x154] ss:$8 sps:$4 sm:$0xff]  }
  0x56   : > { %v311_v2 = vld [vmem:[%s307_s21] sm:$0xff]  ;;  %v312_v3 = vld [vmem:[%s307_s21 + $0x8] sm:$0xff]  ;;  %v313_v11 = vld [vmem:[%s307_s21 + $0x10] sm:$0xff]  ;;  %v365_v47 = vsel %vm363_vm0, %v1578_v46, 0  ;;  %v2292_v49 = vshrl.u32 %v326_v48, 7  ;;  %s1574_s20 = sshll.u32 %s300_s18, 5 }
  0x57   : > { %v2272_v8 = vpack.c.bf16 %v312_v3, %v311_v2  ;;  %v314_v12 = vld [vmem:[%s307_s21 + $0x18] sm:$0xff]  ;;  %v1837_v23 = vld [vmem:[#allocation2 + $0x164] ss:$8 sps:$4 sm:$0xff]   ;;  %v1835_v24 = vld [vmem:[#allocation2 + $0x160] ss:$8 sps:$4 sm:$0xff]   ;;  %377 = vmatpush1.bf16.msra.mxu0 %v365_v47  ;;  %s302_s23 = scalar_lea.vmem [#allocation7], %s1574_s20 }
  0x58   : > { %v2277_v15 = vpack.c.bf16 %v314_v12, %v313_v11  ;;  %v1832_v22 = vld [vmem:[#allocation2 + $0x150] ss:$8 sps:$4 sm:$0xff]   ;;  %v1840_v25 = vld [vmem:[#allocation2 + $0x174] ss:$8 sps:$4 sm:$0xff]   ;;  %v1843_v27 = vld [vmem:[#allocation2 + $0x184] ss:$8 sps:$4 sm:$0xff]  }
  0x59   : > { %1586 = vmatmul.mubr.msk.bf16.vlgmr.msra.gmra.mrb[0].mxu1 %vm356_vm1, %v2272_v8  ;;  %v1838_v26 = vld [vmem:[#allocation2 + $0x170] ss:$8 sps:$4 sm:$0xff]   ;;  %v1841_v28 = vld [vmem:[#allocation2 + $0x180] ss:$8 sps:$4 sm:$0xff]   ;;  %v1846_v29 = vld [vmem:[#allocation2 + $0x194] ss:$8 sps:$4 sm:$0xff]  }
  0x5a   : > { %471 = vmatprep.mubr.bf16.mxu1 %v2097_v0  ;;  %979 = vmatpush1.bf16.msra.mxu1 %v1817_v9  ;;  %v1844_v30 = vld [vmem:[#allocation2 + $0x190] ss:$8 sps:$4 sm:$0xff]   ;;  %v1849_v31 = vld [vmem:[#allocation2 + $0x1a4] ss:$8 sps:$4 sm:$0xff]   ;;  %v1847_v32 = vld [vmem:[#allocation2 + $0x1a0] ss:$8 sps:$4 sm:$0xff]  }
  0x5b   : > { %980 = vmatprep.subr.bf16.mxu1 %v1822_v10  ;;  %v1852_v33 = vld [vmem:[#allocation2 + $0x1b4] ss:$8 sps:$4 sm:$0xff]   ;;  %v1850_v34 = vld [vmem:[#allocation2 + $0x1b0] ss:$8 sps:$4 sm:$0xff]   ;;  %v1855_v35 = vld [vmem:[#allocation2 + $0x1c4] ss:$8 sps:$4 sm:$0xff]   ;;  %1583 = vmatmul.mubr.msk.bf16.vlgmr.msra.gmra.mrb[0].mxu0 %vm356_vm1, %v2272_v8 }
  0x5c   : > { %v1853_v36 = vld [vmem:[#allocation2 + $0x1c0] ss:$8 sps:$4 sm:$0xff]   ;;  %v1858_v37 = vld [vmem:[#allocation2 + $0x1d4] ss:$8 sps:$4 sm:$0xff]   ;;  %v1856_v38 = vld [vmem:[#allocation2 + $0x1d0] ss:$8 sps:$4 sm:$0xff]   ;;  %418 = vmatprep.mubr.bf16.mxu0 %v2097_v0 }
  0x5d   : > { %v1861_v39 = vld [vmem:[#allocation2 + $0x1e4] ss:$8 sps:$4 sm:$0xff]   ;;  %v1859_v40 = vld [vmem:[#allocation2 + $0x1e0] ss:$8 sps:$4 sm:$0xff]   ;;  %v1864_v41 = vld [vmem:[#allocation2 + $0x1f4] ss:$8 sps:$4 sm:$0xff]  }
  0x5e   : > { %981 = vmatpush1.bf16.msra.mxu1 %v1820_v13  ;;  %v1862_v42 = vld [vmem:[#allocation2 + $0x1f0] ss:$8 sps:$4 sm:$0xff]   ;;  %v336_v50 = vsub.s32 2, %v2292_v49  ;;  %v2298_v51 = vld [vmem:[%s2441_s2] sm:$0xf]  ;;  %v340_v52 = vsub.s32 3, %v2292_v49 }
  0x5f   : > { %982 = vmatprep.subr.bf16.mxu1 %v1825_v14  ;;  %v1868_v6 = vld [vmem:[#allocation5 + $0x80] sm:$0xff]   ;;  %v1869_v9 = vld [vmem:[#allocation5 + $0xc8] sm:$0xff]   ;;  %s1482_s29 = sshll.u32 %s302_s23, 4  ;;  %s1691_s8 = sshll.u32 %s2162_s28, 9  ;;  %s2384_s29 = int_to_ptr.vmem [resolvable:$true] %s1482_s29 }
  0x60   : > { %v337_v53 = vrot.slane %v2298_v51, %v336_v50  ;;  %v341_v54 = vrot.slane %v2298_v51, %v340_v52  ;;  %v1892_v50 = vld [vmem:[#allocation2 + $0x30] ss:$8 sps:$4 sm:$0xff]   ;;  %s2389_s10 = scalar_lea.hbm %s2446_s7, %s1691_s8  ;;  %s2398_s28 = scalar_lea.sflag [#allocation4], %s300_s18 }
  0x61   : > { %1587 = vmatmul.mubr.msk.bf16.gmra.mrb[4].mxu1 %vm356_vm1, %v2277_v15  ;;  %s2019_s14 = scalar_lea.vmem %s2384_s29, 512  ;;  %p2462_p1 = scmp.ne.s32.totalorder %s2451_s11, 0 }
  0x62   : > { %983 = vmatpush1.bf16.msra.mxu1 %v1823_v16  ;;  %p2020_p10 = scmp.ne.s32.totalorder %s2384_s29, %s2019_s14  ;;  %s2098_s17 = smov [#allocation7]  }
  0x63   : > { %984 = vmatprep.subr.bf16.mxu1 %v1828_v17  ;;  %1584 = vmatmul.mubr.msk.bf16.gmra.mrb[4].mxu0 %vm356_vm1, %v2277_v15  ;;  %v1870_v15 = vld [vmem:[#allocation5 + $0x88] sm:$0xff]   ;;  %s2023_s19 = sshll.u32 %s2098_s17, 4  ;;  %s2024_s19 = int_to_ptr.vmem [resolvable:$false] %s2023_s19 }
  0x64   : > { %p2021_p2 = pnand %p2020_p10, %p2462_p1  ;;  %s2025_s16 = scalar_lea.vmem %s2024_s19, 1024 }
  0x65   : > { %p2026_p4 = scmp.lt.s32.totalorder %s2384_s29, %s2024_s19  ;;  %p2027_p7 = scmp.lt.s32.totalorder %s2025_s16, %s2019_s14 }
  0x66   : > { %985 = vmatpush1.bf16.msra.mxu1 %v1826_v18  ;;  %v1871_v18 = vld [vmem:[#allocation5 + $0xd0] sm:$0xff]   ;;  %p2022_p3 = pneg %p2021_p2 }
  0x67   : > { %986 = vmatprep.subr.bf16.mxu1 %v1831_v19  ;;  %p2028_p8 = por %p2027_p7, %p2026_p4 }
  0x69   : > { %p2029_p11 = pnand %p2028_p8, %p2022_p3 }
  0x6a   : > { %987 = vmatpush1.bf16.msra.mxu1 %v1829_v20 }
  0x6b   : > { %988 = vmatprep.subr.bf16.mxu1 %v1834_v21 }
  0x6e   : > { %989 = vmatpush1.bf16.msra.mxu1 %v1832_v22 }
  0x6f   : > { %990 = vmatprep.subr.bf16.mxu1 %v1837_v23  ;;  %v1872_v23 = vld [vmem:[#allocation5 + $0x90] sm:$0xff]  }
  0x72   : > { %991 = vmatpush1.bf16.msra.mxu1 %v1835_v24  ;;  %v1873_v24 = vld [vmem:[#allocation5 + $0xd8] sm:$0xff]  }
  0x73   : > { %992 = vmatprep.subr.bf16.mxu1 %v1840_v25  ;;  %v1874_v25 = vld [vmem:[#allocation5 + $0x98] sm:$0xff]  }
  0x76   : > { %993 = vmatpush1.bf16.msra.mxu1 %v1838_v26  ;;  %v1875_v26 = vld [vmem:[#allocation5 + $0xe0] sm:$0xff]  }
  0x77   : > { %994 = vmatprep.subr.bf16.mxu1 %v1843_v27  ;;  %v1876_v27 = vld [vmem:[#allocation5 + $0xa0] sm:$0xff]  }
  0x7a   : > { %995 = vmatpush1.bf16.msra.mxu1 %v1841_v28  ;;  %v1877_v28 = vld [vmem:[#allocation5 + $0xe8] sm:$0xff]  }
  0x7b   : > { %996 = vmatprep.subr.bf16.mxu1 %v1846_v29  ;;  %v1878_v29 = vld [vmem:[#allocation5 + $0xa8] sm:$0xff]  }
  0x7e   : > { %997 = vmatpush1.bf16.msra.mxu1 %v1844_v30  ;;  %v1879_v30 = vld [vmem:[#allocation5 + $0xf0] sm:$0xff]  }
  0x7f   : > { %998 = vmatprep.subr.bf16.mxu1 %v1849_v31  ;;  %v1880_v31 = vld [vmem:[#allocation5 + $0xb0] sm:$0xff]  }
  0x82   : > { %999 = vmatpush1.bf16.msra.mxu1 %v1847_v32  ;;  %v1881_v32 = vld [vmem:[#allocation5 + $0xf8] sm:$0xff]  }
  0x83   : > { %1000 = vmatprep.subr.bf16.mxu1 %v1852_v33  ;;  %v1882_v33 = vld [vmem:[#allocation5 + $0xb8] sm:$0xff]  }
  0x86   : > { %1001 = vmatpush1.bf16.msra.mxu1 %v1850_v34  ;;  %v1883_v34 = vld [vmem:[#allocation2] ss:$8 sps:$4 sm:$0xff]  }
  0x87   : > { %1002 = vmatprep.subr.bf16.mxu1 %v1855_v35  ;;  %v1885_v35 = vld [vmem:[#allocation2 + $0x4] ss:$8 sps:$4 sm:$0xff]  }
  0x88   : > { %709 = vmatprep.subr.bf16.mxu0 %v1885_v35  ;;  %v1577_v35 = vld [vmem:[%s2443_s4 + $0x1] ss:$2 sm:$0x3] }
  0x89   : > { %710 = vmatpush1.bf16.msra.mxu0 %v1883_v34  ;;  %v1928_v34 = vld [vmem:[#allocation2 + $0xf0] ss:$8 sps:$4 sm:$0xff]  }
  0x8a   : > { %1003 = vmatpush1.bf16.msra.mxu1 %v1853_v36  ;;  %v1888_v36 = vld [vmem:[#allocation2 + $0x14] ss:$8 sps:$4 sm:$0xff]  }
  0x8b   : > { %1004 = vmatprep.subr.bf16.mxu1 %v1858_v37  ;;  %v1886_v37 = vld [vmem:[#allocation2 + $0x10] ss:$8 sps:$4 sm:$0xff]   ;;  %711 = vmatprep.subr.bf16.mxu0 %v1888_v36 }
  0x8d   : > { %712 = vmatpush1.bf16.msra.mxu0 %v1886_v37 }
  0x8e   : > { %1005 = vmatpush1.bf16.msra.mxu1 %v1856_v38  ;;  %v2304_v38 = vsub.s32 0, %v2292_v49 }
  0x8f   : > { %1006 = vmatprep.subr.bf16.mxu1 %v1861_v39  ;;  %v1891_v39 = vld [vmem:[#allocation2 + $0x24] ss:$8 sps:$4 sm:$0xff]  }
  0x90   : > { %713 = vmatprep.subr.bf16.mxu0 %v1891_v39  ;;  %v811_v36 = vrot.slane %v1577_v35, %v2304_v38 }
  0x92   : > { %1007 = vmatpush1.bf16.msra.mxu1 %v1859_v40  ;;  %v2307_v40 = vsub.s32 1, %v2292_v49  ;;  %v1897_v49 = vld [vmem:[#allocation2 + $0x44] ss:$8 sps:$4 sm:$0xff]  }
  0x93   : > { %1008 = vmatprep.subr.bf16.mxu1 %v1864_v41  ;;  %v329_v41 = vrot.slane %v2298_v51, %v2304_v38 }
  0x94   : > { %v333_v43 = vrot.slane %v2298_v51, %v2307_v40  ;;  %v815_v37 = vrot.slane %v1577_v35, %v2307_v40 }
  0x96   : > { %1009 = vmatpush1.bf16.msra.mxu1 %v1862_v42  ;;  %v1889_v42 = vld [vmem:[#allocation2 + $0x20] ss:$8 sps:$4 sm:$0xff]  }
  0x97   : > { %1720 = vmatprep.subr.bf16.mxu1 %v1867_v44  ;;  %v1894_v44 = vld [vmem:[#allocation2 + $0x34] ss:$8 sps:$4 sm:$0xff]   ;;  %714 = vmatpush1.bf16.msra.mxu0 %v1889_v42 }
  0x98   : > { %715 = vmatprep.subr.bf16.mxu0 %v1894_v44 }
  0x9b   : > { %716 = vmatpush1.bf16.msra.mxu0 %v1892_v50 }
  0x9c   : > { %717 = vmatprep.subr.bf16.mxu0 %v1897_v49 }
 0x12c   : > { %v463_v55 = vpop.f32.mrb[0].mxu1 }
 0x12d   : > { %v464_v56 = vadd.f32 %v463_v55, %v337_v53  ;;  %v465_v57 = vpop.f32.mrb[1].mxu1 }
 0x12e   : > { %v466_v58 = vadd.f32 %v465_v57, %v341_v54  ;;  %v467_v59 = vpop.f32.mrb[2].mxu1  ;;  %v410_v45 = vpop.f32.mrb[0].mxu0 }
 0x12f   : > { %v468_v60 = vadd.f32 %v467_v59, %v337_v53  ;;  %v469_v61 = vpop.f32.mrb[3].mxu1  ;;  %v484_v63 = vmax.f32 %v464_v56, 0.0  ;;  %v411_v46 = vadd.f32 %v410_v45, %v329_v41  ;;  %v412_v47 = vpop.f32.mrb[1].mxu0 }
 0x130   : > { %v470_v62 = vadd.f32 %v469_v61, %v341_v54  ;;  %v485_v1 = vmax.f32 %v466_v58, 0.0  ;;  %v413_v52 = vadd.f32 %v412_v47, %v333_v43 }
 0x131   : > { %v488_v0 = vmax.f32 %v468_v60, 0.0 }
 0x132   : > { %v489_v2 = vmax.f32 %v470_v62, 0.0  ;;  %v483_v57 = vmax.f32 %v413_v52, 0.0  ;;  %v1895_v62 = vld [vmem:[#allocation2 + $0x40] ss:$8 sps:$4 sm:$0xff]  }
 0x133   : > { %v502_v3 = vpack.c.bf16 %v488_v0, %v484_v63  ;;  %718 = vmatpush1.bf16.msra.mxu0 %v1895_v62 }
 0x134   : > { %v503_v4 = vpack.c.bf16 %v489_v2, %v485_v1  ;;  %v473_v5 = vpop.f32.mrb[4].mxu1  ;;  %v1900_v2 = vld [vmem:[#allocation2 + $0x54] ss:$8 sps:$4 sm:$0xff]  }
 0x135   : > { %v474_v7 = vadd.f32 %v473_v5, %v337_v53  ;;  %v475_v8 = vpop.f32.mrb[5].mxu1  ;;  %719 = vmatprep.subr.bf16.mxu0 %v1900_v2 }
 0x136   : > { %v476_v10 = vadd.f32 %v475_v8, %v341_v54  ;;  %v477_v11 = vpop.f32.mrb[6].mxu1  ;;  %1010 = vmatprep.mubr.bf16.mxu1 %v503_v4 }
 0x137   : > { %v478_v12 = vadd.f32 %v477_v11, %v337_v53  ;;  %v479_v13 = vpop.f32.mrb[7].mxu1  ;;  %1011 = vmatmul.mubr.bf16.vlgmr.msra.gmra.mrb[8].mxu1 %v502_v3  ;;  %v492_v16 = vmax.f32 %v474_v7, 0.0  ;;  %v414_v53 = vpop.f32.mrb[2].mxu0  ;;  %v1898_v11 = vld [vmem:[#allocation2 + $0x50] ss:$8 sps:$4 sm:$0xff]  }
 0x138   : > { %v480_v14 = vadd.f32 %v479_v13, %v341_v54  ;;  %1721 = vmatpush3.bf16.msra.mxu1 %v1868_v6  ;;  %v493_v19 = vmax.f32 %v476_v10, 0.0  ;;  %v482_v54 = vmax.f32 %v411_v46, 0.0  ;;  %v415_v55 = vadd.f32 %v414_v53, %v329_v41  ;;  %v416_v56 = vpop.f32.mrb[3].mxu0  ;;  %v1903_v13 = vld [vmem:[#allocation2 + $0x64] ss:$8 sps:$4 sm:$0xff]   ;;  %720 = vmatpush1.bf16.msra.mxu0 %v1898_v11  ;;  %v1937_v11 = vld [vmem:[#allocation5 + $0x58] sm:$0xff]  }
 0x139   : > { %v496_v17 = vmax.f32 %v478_v12, 0.0  ;;  %1722 = vmatprep.subr.bf16.mxu1 %v1869_v9  ;;  %v417_v58 = vadd.f32 %v416_v56, %v333_v43  ;;  %v420_v59 = vpop.f32.mrb[4].mxu0  ;;  %721 = vmatprep.subr.bf16.mxu0 %v1903_v13  ;;  %v1939_v13 = vld [vmem:[#allocation5 + $0x60] sm:$0xff]  }
 0x13a   : > { %v497_v20 = vmax.f32 %v480_v14, 0.0  ;;  %v486_v60 = vmax.f32 %v415_v55, 0.0  ;;  %v421_v61 = vadd.f32 %v420_v59, %v329_v41  ;;  %v422_v51 = vpop.f32.mrb[5].mxu0 }
 0x13b   : > { %v504_v21 = vpack.c.bf16 %v496_v17, %v492_v16  ;;  %v487_v63 = vmax.f32 %v417_v58, 0.0  ;;  %v423_v0 = vadd.f32 %v422_v51, %v333_v43  ;;  %v424_v1 = vpop.f32.mrb[6].mxu0  ;;  %v1901_v16 = vld [vmem:[#allocation2 + $0x60] ss:$8 sps:$4 sm:$0xff]   ;;  %v1906_v17 = vld [vmem:[#allocation2 + $0x74] ss:$8 sps:$4 sm:$0xff]  }
 0x13c   : > { %v505_v22 = vpack.c.bf16 %v497_v20, %v493_v19  ;;  %1723 = vmatpush3.bf16.msra.mxu1 %v1870_v15  ;;  %v498_v3 = vpack.c.bf16 %v486_v60, %v482_v54  ;;  %v490_v4 = vmax.f32 %v421_v61, 0.0  ;;  %v425_v5 = vadd.f32 %v424_v1, %v329_v41  ;;  %v426_v6 = vpop.f32.mrb[7].mxu0  ;;  %722 = vmatpush1.bf16.msra.mxu0 %v1901_v16  ;;  %v1909_v19 = vld [vmem:[#allocation2 + $0x84] ss:$8 sps:$4 sm:$0xff]   ;;  %v1907_v20 = vld [vmem:[#allocation2 + $0x80] ss:$8 sps:$4 sm:$0xff]  }
 0x13d   : > { %1724 = vmatprep.subr.bf16.mxu1 %v1871_v18  ;;  %v499_v7 = vpack.c.bf16 %v487_v63, %v483_v57  ;;  %v491_v8 = vmax.f32 %v423_v0, 0.0  ;;  %v427_v9 = vadd.f32 %v426_v6, %v333_v43  ;;  %v1904_v18 = vld [vmem:[#allocation2 + $0x70] ss:$8 sps:$4 sm:$0xff]   ;;  %723 = vmatprep.subr.bf16.mxu0 %v1906_v17  ;;  %v1932_v6 = vld [vmem:[#allocation5] sm:$0xff]   ;;  %v1942_v16 = vld [vmem:[#allocation5 + $0x28] sm:$0xff]  }
 0x13e   : > { %1020 = vmatprep.mubr.bf16.mxu1 %v505_v22  ;;  %v494_v10 = vmax.f32 %v425_v5, 0.0  ;;  %v1910_v22 = vld [vmem:[#allocation2 + $0x90] ss:$8 sps:$4 sm:$0xff]   ;;  %v1931_v5 = vld [vmem:[#allocation5 + $0x40] sm:$0xff]  }
 0x13f   : > { %1021 = vmatmul.mubr.bf16.gmra.mrb[12].mxu1 %v504_v21  ;;  %741 = vmatprep.mubr.bf16.mxu0 %v499_v7  ;;  %v495_v12 = vmax.f32 %v427_v9, 0.0  ;;  %v1912_v21 = vld [vmem:[#allocation2 + $0x94] ss:$8 sps:$4 sm:$0xff]   ;;  %v1933_v7 = vld [vmem:[#allocation5 + $0x48] sm:$0xff]  }
 0x140   : > { %1725 = vmatpush3.bf16.msra.mxu1 %v1872_v23  ;;  %v500_v14 = vpack.c.bf16 %v494_v10, %v490_v4  ;;  %724 = vmatpush1.bf16.msra.mxu0 %v1904_v18  ;;  %v1915_v23 = vld [vmem:[#allocation2 + $0xa4] ss:$8 sps:$4 sm:$0xff]   ;;  %v1935_v9 = vld [vmem:[#allocation5 + $0x50] sm:$0xff]  }
 0x141   : > { %1726 = vmatprep.subr.bf16.mxu1 %v1873_v24  ;;  %v501_v15 = vpack.c.bf16 %v495_v12, %v491_v8  ;;  %725 = vmatprep.subr.bf16.mxu0 %v1909_v19  ;;  %v1913_v24 = vld [vmem:[#allocation2 + $0xa0] ss:$8 sps:$4 sm:$0xff]   ;;  %v1936_v10 = vld [vmem:[#allocation5 + $0x10] sm:$0xff]   ;;  %v1938_v12 = vld [vmem:[#allocation5 + $0x18] sm:$0xff]  }
 0x142   : > { %v1934_v8 = vld [vmem:[#allocation5 + $0x8] sm:$0xff]   ;;  %v1943_v17 = vld [vmem:[#allocation5 + $0x70] sm:$0xff]   ;;  %v1945_v19 = vld [vmem:[#allocation5 + $0x78] sm:$0xff]  }
 0x143   : > { %v1944_v18 = vld [vmem:[#allocation5 + $0x30] sm:$0xff]  }
 0x144   : > { %1727 = vmatpush3.bf16.msra.mxu1 %v1874_v25  ;;  %726 = vmatpush1.bf16.msra.mxu0 %v1907_v20  ;;  %v1918_v25 = vld [vmem:[#allocation2 + $0xb4] ss:$8 sps:$4 sm:$0xff]  }
 0x145   : > { %1728 = vmatprep.subr.bf16.mxu1 %v1875_v26  ;;  %727 = vmatprep.subr.bf16.mxu0 %v1912_v21  ;;  %v1916_v26 = vld [vmem:[#allocation2 + $0xb0] ss:$8 sps:$4 sm:$0xff]   ;;  %v318_v21 = vld [vmem:[%s2443_s4] ss:$2 sm:$0x3] }
 0x146   : > { %v1946_v20 = vld [vmem:[#allocation5 + $0x38] sm:$0xff]  }
 0x148   : > { %1729 = vmatpush3.bf16.msra.mxu1 %v1876_v27  ;;  %728 = vmatpush1.bf16.msra.mxu0 %v1910_v22  ;;  %v1921_v27 = vld [vmem:[#allocation2 + $0xc4] ss:$8 sps:$4 sm:$0xff]   ;;  %v542_v22 = vrot.slane %v318_v21, %v2304_v38 }
 0x149   : > { %1730 = vmatprep.subr.bf16.mxu1 %v1877_v28  ;;  %729 = vmatprep.subr.bf16.mxu0 %v1915_v23  ;;  %v1919_v28 = vld [vmem:[#allocation2 + $0xc0] ss:$8 sps:$4 sm:$0xff]   ;;  %v546_v23 = vrot.slane %v318_v21, %v2307_v40 }
 0x14c   : > { %1731 = vmatpush3.bf16.msra.mxu1 %v1878_v29  ;;  %730 = vmatpush1.bf16.msra.mxu0 %v1913_v24  ;;  %v1924_v29 = vld [vmem:[#allocation2 + $0xd4] ss:$8 sps:$4 sm:$0xff]  }
 0x14d   : > { %1732 = vmatprep.subr.bf16.mxu1 %v1879_v30  ;;  %731 = vmatprep.subr.bf16.mxu0 %v1918_v25  ;;  %v1922_v30 = vld [vmem:[#allocation2 + $0xd0] ss:$8 sps:$4 sm:$0xff]  }
 0x150   : > { %1733 = vmatpush3.bf16.msra.mxu1 %v1880_v31  ;;  %732 = vmatpush1.bf16.msra.mxu0 %v1916_v26  ;;  %v1927_v31 = vld [vmem:[#allocation2 + $0xe4] ss:$8 sps:$4 sm:$0xff]  }
 0x151   : > { %1734 = vmatprep.subr.bf16.mxu1 %v1881_v32  ;;  %733 = vmatprep.subr.bf16.mxu0 %v1921_v27  ;;  %v1925_v32 = vld [vmem:[#allocation2 + $0xe0] ss:$8 sps:$4 sm:$0xff]  }
 0x154   : > { %1735 = vmatpush3.bf16.msra.mxu1 %v1882_v33  ;;  %734 = vmatpush1.bf16.msra.mxu0 %v1919_v28  ;;  %v1930_v33 = vld [vmem:[#allocation2 + $0xf4] ss:$8 sps:$4 sm:$0xff]  }
 0x155   : > { %735 = vmatprep.subr.bf16.mxu0 %v1924_v29 }
 0x158   : > { %736 = vmatpush1.bf16.msra.mxu0 %v1922_v30 }
 0x159   : > { %737 = vmatprep.subr.bf16.mxu0 %v1927_v31 }
 0x15c   : > { %738 = vmatpush1.bf16.msra.mxu0 %v1925_v32 }
 0x15d   : > { %739 = vmatprep.subr.bf16.mxu0 %v1930_v33 }
 0x160   : > { %740 = vmatpush1.bf16.msra.mxu0 %v1928_v34 }
 0x161   : > { %1692 = vmatprep.subr.bf16.mxu0 %v1931_v5 }
 0x163   : > { %742 = vmatmul.mubr.bf16.vlgmr.msra.gmra.mrb[8].mxu0 %v498_v3 }
 0x164   : > { %751 = vmatprep.mubr.bf16.mxu0 %v501_v15  ;;  %1693 = vmatpush3.bf16.msra.mxu0 %v1932_v6  ;;  %v1941_v15 = vld [vmem:[#allocation5 + $0x68] sm:$0xff]  }
 0x165   : > { %1694 = vmatprep.subr.bf16.mxu0 %v1933_v7 }
 0x168   : > { %1695 = vmatpush3.bf16.msra.mxu0 %v1934_v8 }
 0x169   : > { %1696 = vmatprep.subr.bf16.mxu0 %v1935_v9 }
 0x16b   : > { %752 = vmatmul.mubr.bf16.gmra.mrb[12].mxu0 %v500_v14  ;;  %v1940_v14 = vld [vmem:[#allocation5 + $0x20] sm:$0xff]  }
 0x16c   : > { %1697 = vmatpush3.bf16.msra.mxu0 %v1936_v10 }
 0x16d   : > { %1698 = vmatprep.subr.bf16.mxu0 %v1937_v11 }
 0x170   : > { %1699 = vmatpush3.bf16.msra.mxu0 %v1938_v12 }
 0x171   : > { %1700 = vmatprep.subr.bf16.mxu0 %v1939_v13 }
 0x174   : > { %1701 = vmatpush3.bf16.msra.mxu0 %v1940_v14 }
 0x175   : > { %1702 = vmatprep.subr.bf16.mxu0 %v1941_v15 }
 0x178   : > { %1703 = vmatpush3.bf16.msra.mxu0 %v1942_v16 }
 0x179   : > { %1704 = vmatprep.subr.bf16.mxu0 %v1943_v17 }
 0x17c   : > { %1705 = vmatpush3.bf16.msra.mxu0 %v1944_v18 }
 0x17d   : > { %1706 = vmatprep.subr.bf16.mxu0 %v1945_v19 }
 0x180   : > { %1707 = vmatpush3.bf16.msra.mxu0 %v1946_v20 }
 0x20a   : > { %v1012_v39 = vpop.f32.mrb[8].mxu1 }
 0x20b   : > { %v1013_v41 = vadd.f32 %v1012_v39, %v811_v36  ;;  %v1014_v42 = vpop.f32.mrb[9].mxu1 }
 0x20c   : > { %v1015_v43 = vadd.f32 %v1014_v42, %v815_v37  ;;  %v1016_v44 = vpop.f32.mrb[10].mxu1 }
 0x20d   : > { %v1017_v45 = vadd.f32 %v1016_v44, %v811_v36  ;;  %v1018_v46 = vpop.f32.mrb[11].mxu1  ;;  %v1031_v50 = vmax.f32 %v1013_v41, 0.0 }
 0x20e   : > { %v1019_v47 = vadd.f32 %v1018_v46, %v815_v37  ;;  %v1032_v53 = vmax.f32 %v1015_v43, 0.0 }
 0x20f   : > { %v1033_v52 = vmax.f32 %v1017_v45, 0.0 }
 0x210   : > { %v1034_v49 = vmax.f32 %v1019_v47, 0.0 }
 0x211   : > { %v1039_v54 = vpack.c.bf16 %v1033_v52, %v1031_v50 }
 0x212   : > { %v1040_v55 = vpack.c.bf16 %v1034_v49, %v1032_v53  ;;  %v1022_v56 = vpop.f32.mrb[12].mxu1 }
 0x213   : > { %v1023_v57 = vadd.f32 %v1022_v56, %v811_v36  ;;  %v1024_v58 = vpop.f32.mrb[13].mxu1 }
 0x214   : > { %v1025_v59 = vadd.f32 %v1024_v58, %v815_v37  ;;  %v1026_v60 = vpop.f32.mrb[14].mxu1  ;;  %1389 = vmatprep.mubr.bf16.mxu1 %v1040_v55 }
 0x215   : > { %v1027_v61 = vadd.f32 %v1026_v60, %v811_v36  ;;  %v1028_v51 = vpop.f32.mrb[15].mxu1  ;;  %1390 = vmatmul.mubr.bf16.vlgmr.msra.gmra.mrb[16].mxu1 %v1039_v54  ;;  %v1035_v63 = vmax.f32 %v1023_v57, 0.0  ;;  %v2324_v54 = vand.u32 127, %v326_v48  ;;  %v1669_v57 = vld [vmem:[%s2445_s6 + $0x1] ss:$0 sm:$0xff] }
 0x216   : > { %v1029_v62 = vadd.f32 %v1028_v51, %v815_v37  ;;  %v1036_v1 = vmax.f32 %v1025_v59, 0.0 }
 0x217   : > { %v1037_v0 = vmax.f32 %v1027_v61, 0.0  ;;  %vm1408_vm2 = vcmp.ge.s32.totalorder %v2324_v54, 6  ;;  %vm1409_vm3 = vcmp.lt.s32.totalorder %v2324_v54, 12  ;;  %vm1455_vm5 = vcmp.lt.s32.totalorder %v2324_v54, 6 }
 0x218   : > { %v1038_v2 = vmax.f32 %v1029_v62, 0.0  ;;  %vm2333_vm4 = vmand %vm1408_vm2, %vm1409_vm3 }
 0x219   : > { %v1041_v3 = vpack.c.bf16 %v1037_v0, %v1035_v63 }
 0x21a   : > { %v1042_v4 = vpack.c.bf16 %v1038_v2, %v1036_v1 }
 0x21c   : > { %1397 = vmatprep.mubr.bf16.mxu1 %v1042_v4 }
 0x21d   : > { %1398 = vmatmul.mubr.bf16.gmra.mrb[20].mxu1 %v1041_v3 }
 0x236   : > { %v743_v24 = vpop.f32.mrb[8].mxu0 }
 0x237   : > { %v744_v25 = vadd.f32 %v743_v24, %v542_v22  ;;  %v745_v26 = vpop.f32.mrb[9].mxu0 }
 0x238   : > { %v746_v27 = vadd.f32 %v745_v26, %v546_v23  ;;  %v747_v28 = vpop.f32.mrb[10].mxu0 }
 0x239   : > { %v762_v29 = vmax.f32 %v744_v25, 0.0  ;;  %v748_v30 = vadd.f32 %v747_v28, %v542_v22  ;;  %v749_v31 = vpop.f32.mrb[11].mxu0 }
 0x23a   : > { %v763_v32 = vmax.f32 %v746_v27, 0.0  ;;  %v750_v33 = vadd.f32 %v749_v31, %v546_v23 }
 0x23b   : > { %v764_v34 = vmax.f32 %v748_v30, 0.0 }
 0x23c   : > { %v765_v35 = vmax.f32 %v750_v33, 0.0 }
 0x23d   : > { %v770_v36 = vpack.c.bf16 %v764_v34, %v762_v29 }
 0x23e   : > { %v771_v37 = vpack.c.bf16 %v765_v35, %v763_v32  ;;  %v753_v39 = vpop.f32.mrb[12].mxu0 }
 0x23f   : > { %v754_v41 = vadd.f32 %v753_v39, %v542_v22  ;;  %v755_v42 = vpop.f32.mrb[13].mxu0 }
 0x240   : > { %v756_v38 = vadd.f32 %v755_v42, %v546_v23  ;;  %v757_v43 = vpop.f32.mrb[14].mxu0  ;;  %1207 = vmatprep.mubr.bf16.mxu0 %v771_v37 }
 0x241   : > { %v766_v40 = vmax.f32 %v754_v41, 0.0  ;;  %v758_v44 = vadd.f32 %v757_v43, %v542_v22  ;;  %v759_v45 = vpop.f32.mrb[15].mxu0  ;;  %1208 = vmatmul.mubr.bf16.vlgmr.msra.gmra.mrb[16].mxu0 %v770_v36 }
 0x242   : > { %v767_v46 = vmax.f32 %v756_v38, 0.0  ;;  %v760_v47 = vadd.f32 %v759_v45, %v546_v23 }
 0x243   : > { %v768_v50 = vmax.f32 %v758_v44, 0.0  ;;  %v1652_v44 = vld [vmem:[%s2445_s6] ss:$0 sm:$0xff] }
 0x244   : > { %v769_v52 = vmax.f32 %v760_v47, 0.0 }
 0x245   : > { %v772_v53 = vpack.c.bf16 %v768_v50, %v766_v40 }
 0x246   : > { %v773_v49 = vpack.c.bf16 %v769_v52, %v767_v46 }
 0x248   : > { %1215 = vmatprep.mubr.bf16.mxu0 %v773_v49 }
 0x249   : > { %1216 = vmatmul.mubr.bf16.gmra.mrb[20].mxu0 %v772_v53 }
 0x2e8   : > { %v1736_v55 = vpop.f32.mrb[16].mxu1 }
 0x2e9   : > { %v1737_v56 = vpop.f32.mrb[17].mxu1 }
 0x2ea   : > { %v1738_v58 = vadd.f32 %v1737_v56, %v1736_v55  ;;  %v1739_v59 = vpop.f32.mrb[18].mxu1 }
 0x2eb   : > { %v1740_v60 = vpop.f32.mrb[19].mxu1 }
 0x2ec   : > { %v1741_v48 = vadd.f32 %v1740_v60, %v1739_v59  ;;  %v2337_v51 = vadd.f32 %v1738_v58, %v1669_v57 }
 0x2ee   : > { %v1411_v62 = vsel %vm2333_vm4, %v2337_v51, -1e+30  ;;  %v2342_v63 = vadd.f32 %v1741_v48, %v1669_v57 }
 0x2ef   : > { %1415 = vmax.xlane.f32.xlu0 %v1411_v62 }
 0x2f0   : > { %v1742_v0 = vpop.f32.mrb[20].mxu1  ;;  %v1412_v4 = vsel %vm2333_vm4, %v2342_v63, -1e+30 }
 0x2f1   : > { %v1743_v1 = vpop.f32.mrb[21].mxu1 }
 0x2f2   : > { %v1744_v2 = vadd.f32 %v1743_v1, %v1742_v0  ;;  %v1745_v3 = vpop.f32.mrb[22].mxu1 }
 0x2f3   : > { %v1746_v5 = vpop.f32.mrb[23].mxu1  ;;  %1417 = vmax.xlane.f32.xlu0 %v1412_v4 }
 0x2f4   : > { %v1747_v6 = vadd.f32 %v1746_v5, %v1745_v3  ;;  %v2347_v7 = vadd.f32 %v1744_v2, %v1669_v57 }
 0x2f6   : > { %v1413_v8 = vsel %vm2333_vm4, %v2347_v7, -1e+30  ;;  %v2352_v9 = vadd.f32 %v1747_v6, %v1669_v57 }
 0x2f7   : > { %1419 = vmax.xlane.f32.xlu1 %v1413_v8 }
 0x2f8   : > { %v1414_v10 = vsel %vm2333_vm4, %v2352_v9, -1e+30 }
 0x2fb   : > { %1421 = vmax.xlane.f32.xlu1 %v1414_v10 }
 0x314   : > { %v1708_v27 = vpop.f32.mrb[16].mxu0 }
 0x315   : > { %v1709_v28 = vpop.f32.mrb[17].mxu0 }
 0x316   : > { %v1711_v29 = vpop.f32.mrb[18].mxu0  ;;  %v1710_v31 = vadd.f32 %v1709_v28, %v1708_v27 }
 0x317   : > { %v1712_v30 = vpop.f32.mrb[19].mxu0 }
 0x318   : > { %v1713_v32 = vadd.f32 %v1712_v30, %v1711_v29  ;;  %v1210_v50 = vadd.f32 %v1710_v31, %v1652_v44 }
 0x31a   : > { %v1213_v57 = vadd.f32 %v1713_v32, %v1652_v44 }
 0x31c   : > { %v1714_v33 = vpop.f32.mrb[20].mxu0 }
 0x31d   : > { %v1715_v34 = vpop.f32.mrb[21].mxu0 }
 0x31e   : > { %v1717_v35 = vpop.f32.mrb[22].mxu0  ;;  %v1716_v37 = vadd.f32 %v1715_v34, %v1714_v33 }
 0x31f   : > { %v1718_v36 = vpop.f32.mrb[23].mxu0 }
 0x320   : > { %v1719_v39 = vadd.f32 %v1718_v36, %v1717_v35 }
 0x322   : > { %v1221_v2 = vadd.f32 %v1719_v39, %v1652_v44 }
 0x37c   : > { %v1416_v11 = vpop.xlane.xlu0 %1415 }
 0x37d   : > { %v1423_v12 = vsub.f32 %v1411_v62, %v1416_v11 }
 0x37f   : > { %v1427_v13 = vmul.f32 1.442695, %v1423_v12 }
 0x380   : > { %v1418_v14 = vpop.xlane.xlu0 %1417 }
 0x381   : > { %1947 = vpow2.f32 %v1427_v13  ;;  %v1424_v15 = vsub.f32 %v1412_v4, %v1418_v14 }
 0x383   : > { %v1429_v16 = vmul.f32 1.442695, %v1424_v15 }
 0x384   : > { %v1420_v17 = vpop.xlane.xlu1 %1419 }
 0x385   : > { %1949 = vpow2.f32 %v1429_v16  ;;  %v1425_v18 = vsub.f32 %v1413_v8, %v1420_v17 }
 0x387   : > { %v1431_v19 = vmul.f32 1.442695, %v1425_v18 }
 0x388   : > { %v1422_v20 = vpop.xlane.xlu1 %1421 }
 0x389   : > { %1951 = vpow2.f32 %v1431_v19  ;;  %v2357_v21 = vsub.f32 %v1414_v10, %v1422_v20 }
 0x38b   : > { %v1948_v22 = vpop.eup %1947  ;;  %v1433_v23 = vmul.f32 1.442695, %v2357_v21 }
 0x38c   : > { %1435 = vadd.xlane.f32.xlu0 %v1948_v22 }
 0x38d   : > { %1953 = vpow2.f32 %v1433_v23 }
 0x38f   : > { %v1950_v24 = vpop.eup %1949 }
 0x390   : > { %1437 = vadd.xlane.f32.xlu1 %v1950_v24 }
 0x393   : > { %v1952_v25 = vpop.eup %1951 }
 0x394   : > { %1439 = vadd.xlane.f32.xlu0 %v1952_v25 }
 0x397   : > { %v1954_v26 = vpop.eup %1953 }
 0x398   : > { %1441 = vadd.xlane.f32.xlu1 %v1954_v26 }
 0x419   : > { %v1436_v41 = vpop.xlane.xlu0 %1435 }
 0x41a   : > { %1955 = vlog2.f32 %v1436_v41 }
 0x41d   : > { %v1438_v42 = vpop.xlane.xlu1 %1437 }
 0x41e   : > { %1957 = vlog2.f32 %v1438_v42 }
 0x421   : > { %v1440_v38 = vpop.xlane.xlu0 %1439 }
 0x422   : > { %1959 = vlog2.f32 %v1440_v38 }
 0x424   : > { %v1956_v43 = vpop.eup %1955 }
 0x425   : > { %v1444_v40 = vmul.f32 0.6931472, %v1956_v43  ;;  %v1442_v45 = vpop.xlane.xlu1 %1441 }
 0x426   : > { %1961 = vlog2.f32 %v1442_v45 }
 0x427   : > { %v1451_v46 = vsub.f32 %v1423_v12, %v1444_v40 }
 0x428   : > { %v1958_v47 = vpop.eup %1957 }
 0x429   : > { %v1456_v52 = vsel %vm1409_vm3, %v1451_v46, %v2337_v51  ;;  %v1446_v53 = vmul.f32 0.6931472, %v1958_v47  ;;  %v1218_v51 = vadd.f32 %v1716_v37, %v1652_v44 }
 0x42a   : > { %v1460_v49 = vsel %vm1455_vm5, %v1210_v50, %v1456_v52 }
 0x42b   : > { %1464 = vst [vmem:[%s302_s23] sm:$0xff] %v1460_v49  ;;  %v1452_v55 = vsub.f32 %v1424_v15, %v1446_v53 }
 0x42c   : > { %v1960_v56 = vpop.eup %1959 }
 0x42d   : > { %v1457_v58 = vsel %vm1409_vm3, %v1452_v55, %v2342_v63  ;;  %v1448_v59 = vmul.f32 0.6931472, %v1960_v56 }
 0x42e   : > { %v1461_v60 = vsel %vm1455_vm5, %v1213_v57, %v1457_v58 }
 0x42f   : > { %1465 = vst [vmem:[%s302_s23 + $0x8] sm:$0xff] %v1461_v60  ;;  %v1453_v61 = vsub.f32 %v1425_v18, %v1448_v59 }
 0x430   : > { %v1962_v48 = vpop.eup %1961 }
 0x431   : > { %v1458_v62 = vsel %vm1409_vm3, %v1453_v61, %v2347_v7  ;;  %v1450_v0 = vmul.f32 0.6931472, %v1962_v48 }
 0x432   : > { %v1462_v63 = vsel %vm1455_vm5, %v1218_v51, %v1458_v62 }
 0x433   : > { %1466 = vst [vmem:[%s302_s23 + $0x10] sm:$0xff] %v1462_v63  ;;  %v1454_v1 = vsub.f32 %v2357_v21, %v1450_v0 }
 0x435   : > { %v1459_v3 = vsel %vm1409_vm3, %v1454_v1, %v2352_v9 }
 0x436   : > { %v1463_v4 = vsel %vm1455_vm5, %v1221_v2, %v1459_v3 }
 0x437   : > { %1467 = vst [vmem:[%s302_s23 + $0x18] sm:$0xff] %v1463_v4 }
 0x438   : > { %2032 = shalt.err (!%p2029_p11)
}
 0x439   : > { %s2033_s13 = scalar_lea.hbm %s2389_s10, 512  ;;  %s2037_s21 = scalar_lea.hbm %s2446_s7, 1024 }
 0x43a   : > { %p2034_p13 = scmp.ne.s32.totalorder %s2389_s10, %s2033_s13  ;;  %p2038_p6 = scmp.lt.u32.totalorder %s2389_s10, %s2446_s7 }
 0x43b   : > { %p2039_p9 = scmp.lt.u32.totalorder %s2037_s21, %s2033_s13  ;;  %p2041_p10 = scmp.lt.u32.totalorder %s2033_s13, %s2389_s10 }
 0x43c   : > { %p2035_p0 = pnand %p2034_p13, %p2462_p1 }
 0x43d   : > { %p2040_p12 = por %p2039_p9, %p2038_p6 }
 0x43e   : > { %p2036_p5 = pneg %p2035_p0 }
 0x43f   : > { %p2042_p2 = por %p2041_p10, %p2040_p12 }
 0x441   : > { %p2043_p3 = pnand %p2042_p2, %p2036_p5 }
 0x443   : > { %2046 = shalt.err (!%p2043_p3)
}
 0x444   : > { %s2099_s8 = smov 128   ;;  %s2100_s9 = smov 8  }
 0x445   : > { %1756 = dma.vmem_to_hbm [thread:$0]  (%p2462_p1), %s2384_s29, 512, %s2389_s10, %s2398_s28, %s2099_s8, %s2099_s8, %s2100_s9  }
 0x446 PF: > { %p1773_p4 = scmp.ge.s32.totalorder %s2089_s27, 2  ;;  %s1497_s15 = sand.u32 1, %s2077_s24  }
 0x447   : > { %p2463_p7 = scmp.ne.s32.totalorder %s2452_s12, 0  ;;  %s1498_s14 = scalar_lea.sflag [#allocation4], %s1497_s15 }
 0x449   : > { %p1766_p8 = pnand %p1773_p4, %p2463_p7 }
 0x44b   : > { %2072 = dma.done.wait (!%p1766_p8), %s1498_s14, 512  }
 0x44c   : > { %2074 = vsyncadd (!%p1766_p8), %s1498_s14, 4294966784  ;;  %s2464_s17 = sld [smem:[#allocation11_spill]]  ;;  %p19_p11 = scmp.ge.s32.totalorder %s2166_s30, 4  }
 0x44d   : > { %s2465_s24 = smov %s2081_s25  ;;  %s2466_s25 = smov %s2085_s26 }
 0x44e   : > { %s2468_s27 = smov %s2166_s30  ;;  %21 = sbr.rel (!%p19_p11) target bundleno = 5 (0x5), region = 95 }
 0x452   : > { %s2467_s26 = smov %s2464_s17 }
 0x455   :  { %1503 = vsyncpa [#allocation3], 1 }
 0x456   :  { %1505 = vsyncpa [#allocation3 + $0x1], 1 }
 0x457   :  { %1506 = vsyncpa [#allocation6], 1 }
 0x458   :  { %1507 = vsyncpa [#allocation4], 1 }
 0x459   :  { %1509 = vsyncpa [#allocation4 + $0x1], 1 }

</bundles_post_ra>
